<compile_context>
chip_gen: v6e
topology: v6e:2x2x1
jax: 0.10.0
libtpu: 0.0.40
codegen_flags: <defaults>
</compile_context>

<pallas_src>
import functools

import jax
import jax.numpy as jnp
from jax.experimental import pallas as pl
from jax.experimental.pallas import tpu as pltpu

HEAD_NAMES = ("Reliability", "Privacy", "Security", "Resilience", "Safety")

_LANE_BASES = (256, 128)   # prefer 256-multiples (v6e/v7x MXU), 128 fallback
_SUB_BASES = (16, 8)       # bf16 packs 16 rows per sublane group


def _vmem_limit_bytes():
    """Generation-aware VMEM limit: ~75% of capacity, capped at 100 MiB.
    v5e/v6e (128 MiB) -> 100 MiB, v7x (64 MiB) -> 48 MiB."""
    cap = None
    try:
        cap = getattr(pltpu.get_tpu_info(), "vmem_capacity_bytes", None)
    except Exception:
        cap = None
    if not cap:
        cap = 64 * 1024 * 1024
    return min(int(cap) * 3 // 4, 100 * 1024 * 1024)


VMEM_LIMIT = _vmem_limit_bytes()


def _tile(dim, target, bases):
    """Largest divisor of `dim` <= target that is a multiple of one of `bases`
    (tried in order); falls back to the full dim, which is always legal."""
    if dim <= target:
        return dim
    for base in bases:
        t = (target // base) * base
        while t >= base:
            if dim % t == 0:
                return t
            t -= base
    return dim


def _row_tile(m, target=256):
    """Row (sublane) tile. Ensures >=2 grid blocks when possible so both v7x
    TensorCores get work on a single 'parallel' grid axis."""
    t = _tile(m, target, _SUB_BASES)
    if m // t < 2:
        t2 = _tile(m, max(m // 2, 8), _SUB_BASES)
        if m // t2 >= 2:
            t = t2
    return t


def _gelu_tanh(x):
    # TODO(synk): HuggingFace BERT uses exact (erf) GELU; the tanh approximation
    # is used here for a guaranteed-clean Mosaic lowering (tiny numerical drift).
    return 0.5 * x * (1.0 + jnp.tanh(0.7978845608028654 * (x + 0.044715 * x * x * x)))


# ------------------- fused QKV projection: (x @ w + b) * col_scale -----------

def _matmul_bias_scale_kernel(x_ref, w_ref, b_ref, s_ref, o_ref, acc_ref):
    @pl.when(pl.program_id(2) == 0)
    def _():
        acc_ref[...] = jnp.zeros_like(acc_ref)

    acc_ref[...] += jnp.dot(x_ref[...], w_ref[...],
                            preferred_element_type=jnp.float32)

    @pl.when(pl.program_id(2) == pl.num_programs(2) - 1)
    def _():
        # col_scale folds 1/sqrt(dH) into the Q columns (free in the epilogue).
        o_ref[...] = ((acc_ref[...] + b_ref[...]) * s_ref[...]).astype(o_ref.dtype)


def matmul_bias_scale(x, w, b, col_scale, out_dtype=None, tm=256, tn=512, tk=512):
    """(x @ w + b) * col_scale.  x: [M, K] bf16, w: [K, N] bf16, b/scale: [*, N] f32."""
    M, K = x.shape
    N = w.shape[1]
    out_dtype = out_dtype or x.dtype
    tm = _row_tile(M, tm)
    tn = _tile(N, tn, _LANE_BASES)
    tk = _tile(K, tk, _LANE_BASES)
    return pl.pallas_call(
        _matmul_bias_scale_kernel,
        out_shape=jax.ShapeDtypeStruct((M, N), out_dtype),
        grid_spec=pltpu.PrefetchScalarGridSpec(
            num_scalar_prefetch=0,
            grid=(M // tm, N // tn, K // tk),
            in_specs=[
                pl.BlockSpec((tm, tk), lambda i, j, k: (i, k)),
                pl.BlockSpec((tk, tn), lambda i, j, k: (k, j)),
                pl.BlockSpec((1, tn), lambda i, j, k: (0, j)),
                pl.BlockSpec((1, tn), lambda i, j, k: (0, j)),
            ],
            out_specs=pl.BlockSpec((tm, tn), lambda i, j, k: (i, j)),
            scratch_shapes=[pltpu.VMEM((tm, tn), jnp.float32)],
        ),
        compiler_params=pltpu.CompilerParams(
            dimension_semantics=("parallel", "parallel", "arbitrary"),
            vmem_limit_bytes=VMEM_LIMIT),
    )(x, w, b.reshape(1, N).astype(jnp.float32),
      col_scale.reshape(1, N).astype(jnp.float32))


# ------------------- matmul + bias + residual + LayerNorm --------------------

def _matmul_res_ln_kernel(x_ref, w_ref, b_ref, r_ref, g_ref, bb_ref,
                          o_ref, acc_ref, *, eps):
    @pl.when(pl.program_id(1) == 0)
    def _():
        acc_ref[...] = jnp.zeros_like(acc_ref)

    acc_ref[...] += jnp.dot(x_ref[...], w_ref[...],
                            preferred_element_type=jnp.float32)

    @pl.when(pl.program_id(1) == pl.num_programs(1) - 1)
    def _():
        y = acc_ref[...] + b_ref[...] + r_ref[...].astype(jnp.float32)
        mu = jnp.mean(y, axis=-1, keepdims=True)
        yc = y - mu
        var = jnp.mean(yc * yc, axis=-1, keepdims=True)
        y = yc * jax.lax.rsqrt(var + eps)
        o_ref[...] = (y * g_ref[...] + bb_ref[...]).astype(o_ref.dtype)


def matmul_bias_residual_ln(x, w, b, residual, gamma, beta, eps=1e-12,
                            tm=256, tk=512):
    """LayerNorm(x @ w + b + residual).  N (= hidden) stays whole in the output
    block so the LN reduction is fully in-kernel."""
    M, K = x.shape
    N = w.shape[1]
    tm = _row_tile(M, tm)
    tk = _tile(K, tk, _LANE_BASES)
    return pl.pallas_call(
        functools.partial(_matmul_res_ln_kernel, eps=eps),
        out_shape=jax.ShapeDtypeStruct((M, N), residual.dtype),
        grid_spec=pltpu.PrefetchScalarGridSpec(
            num_scalar_prefetch=0,
            grid=(M // tm, K // tk),
            in_specs=[
                pl.BlockSpec((tm, tk), lambda i, k: (i, k)),
                pl.BlockSpec((tk, N), lambda i, k: (k, 0)),
                pl.BlockSpec((1, N), lambda i, k: (0, 0)),
                pl.BlockSpec((tm, N), lambda i, k: (i, 0)),
                pl.BlockSpec((1, N), lambda i, k: (0, 0)),
                pl.BlockSpec((1, N), lambda i, k: (0, 0)),
            ],
            out_specs=pl.BlockSpec((tm, N), lambda i, k: (i, 0)),
            scratch_shapes=[pltpu.VMEM((tm, N), jnp.float32)],
        ),
        compiler_params=pltpu.CompilerParams(
            dimension_semantics=("parallel", "arbitrary"),
            vmem_limit_bytes=VMEM_LIMIT),
    )(x, w, b.reshape(1, N).astype(jnp.float32), residual,
      gamma.reshape(1, N).astype(jnp.float32),
      beta.reshape(1, N).astype(jnp.float32))


# ----------------- fused FFN (intermediate dim streamed) + residual LN --------

def _ffn_kernel(x_ref, iw_ref, ib_ref, ow_ref, ob_ref, g_ref, b_ref,
                o_ref, acc_ref, *, eps):
    c = pl.program_id(1)

    @pl.when(c == 0)
    def _():
        acc_ref[...] = jnp.zeros_like(acc_ref)

    x = x_ref[...]                                               # (tm, H) bf16, resident over c
    h = jnp.dot(x, iw_ref[...], preferred_element_type=jnp.float32) + ib_ref[...]
    h = _gelu_tanh(h)                                            # (tm, tI) f32 chunk only
    acc_ref[...] += jnp.dot(h.astype(ow_ref.dtype), ow_ref[...],
                            preferred_element_type=jnp.float32)

    @pl.when(c == pl.num_programs(1) - 1)
    def _():
        y = acc_ref[...] + ob_ref[...] + x.astype(jnp.float32)   # residual add
        mu = jnp.mean(y, axis=-1, keepdims=True)
        yc = y - mu
        var = jnp.mean(yc * yc, axis=-1, keepdims=True)
        y = yc * jax.lax.rsqrt(var + eps)
        o_ref[...] = (y * g_ref[...] + b_ref[...]).astype(o_ref.dtype)


def ffn_fused(x, i_w, i_b, o_w, o_b, gamma, beta, eps=1e-12, tm=256, ti=512):
    """LayerNorm(gelu(x @ i_w + i_b) @ o_w + o_b + x).
    The intermediate dim is a (streamed) grid axis: i_w / o_w are tiled instead
    of living whole in VMEM, and the f32 intermediate is only (tm, ti)."""
    M, H = x.shape
    I = i_w.shape[1]
    tm = _row_tile(M, tm)
    ti = _tile(I, ti, _LANE_BASES)
    return pl.pallas_call(
        functools.partial(_ffn_kernel, eps=eps),
        out_shape=jax.ShapeDtypeStruct((M, H), x.dtype),
        grid_spec=pltpu.PrefetchScalarGridSpec(
            num_scalar_prefetch=0,
            grid=(M // tm, I // ti),
            in_specs=[
                pl.BlockSpec((tm, H), lambda i, c: (i, 0)),   # resident across c
                pl.BlockSpec((H, ti), lambda i, c: (0, c)),   # streamed
                pl.BlockSpec((1, ti), lambda i, c: (0, c)),
                pl.BlockSpec((ti, H), lambda i, c: (c, 0)),   # streamed
                pl.BlockSpec((1, H), lambda i, c: (0, 0)),
                pl.BlockSpec((1, H), lambda i, c: (0, 0)),
                pl.BlockSpec((1, H), lambda i, c: (0, 0)),
            ],
            out_specs=pl.BlockSpec((tm, H), lambda i, c: (i, 0)),
            scratch_shapes=[pltpu.VMEM((tm, H), jnp.float32)],
        ),
        compiler_params=pltpu.CompilerParams(
            dimension_semantics=("parallel", "arbitrary"),
            vmem_limit_bytes=VMEM_LIMIT),
    )(x, i_w, i_b.reshape(1, I).astype(jnp.float32), o_w,
      o_b.reshape(1, H).astype(jnp.float32),
      gamma.reshape(1, H).astype(jnp.float32),
      beta.reshape(1, H).astype(jnp.float32))


# ------------------------- embedding LayerNorm (no residual) ------------------

def _ln_kernel(x_ref, g_ref, b_ref, o_ref, *, eps):
    x = x_ref[...].astype(jnp.float32)
    mu = jnp.mean(x, axis=-1, keepdims=True)
    xc = x - mu
    var = jnp.mean(xc * xc, axis=-1, keepdims=True)
    y = xc * jax.lax.rsqrt(var + eps)
    o_ref[...] = (y * g_ref[...] + b_ref[...]).astype(o_ref.dtype)


def layernorm(x, gamma, beta, eps=1e-12, out_dtype=None, tm=256):
    M, H = x.shape
    tm = _row_tile(M, tm)
    out_dtype = out_dtype or x.dtype
    return pl.pallas_call(
        functools.partial(_ln_kernel, eps=eps),
        out_shape=jax.ShapeDtypeStruct((M, H), out_dtype),
        grid_spec=pltpu.PrefetchScalarGridSpec(
            num_scalar_prefetch=0,
            grid=(M // tm,),
            in_specs=[
                pl.BlockSpec((tm, H), lambda i: (i, 0)),
                pl.BlockSpec((1, H), lambda i: (0, 0)),
                pl.BlockSpec((1, H), lambda i: (0, 0)),
            ],
            out_specs=pl.BlockSpec((tm, H), lambda i: (i, 0)),
        ),
        compiler_params=pltpu.CompilerParams(
            dimension_semantics=("parallel",),
            vmem_limit_bytes=VMEM_LIMIT),
    )(x, gamma.reshape(1, H).astype(jnp.float32),
      beta.reshape(1, H).astype(jnp.float32))


# ----------------------------------- attention --------------------------------

def _attn_kernel(qkv_ref, m_ref, o_ref, *, n_heads):
    # qkv_ref: (1, S, 3H) bf16 — Q/K/V for all heads of one batch element.
    # The 1/sqrt(dH) scale is already folded into the Q columns (QKV epilogue).
    S = qkv_ref.shape[1]
    H = qkv_ref.shape[2] // 3
    dH = H // n_heads
    m = m_ref[0]                                                  # (1, S) additive mask
    for h in range(n_heads):                                      # static unroll
        q = qkv_ref[0, :, h * dH:(h + 1) * dH]                    # (S, dH)
        k = qkv_ref[0, :, H + h * dH:H + (h + 1) * dH]
        v = qkv_ref[0, :, 2 * H + h * dH:2 * H + (h + 1) * dH]
        s = jnp.einsum("qd,kd->qk", q, k,
                       preferred_element_type=jnp.float32) + m    # (S, S) f32
        s = s - jnp.max(s, axis=-1, keepdims=True)
        p = jnp.exp(s)
        p = p * pl.reciprocal(jnp.sum(p, axis=-1, keepdims=True), approx=True)
        ctx = jnp.dot(p.astype(v.dtype), v, preferred_element_type=jnp.float32)
        o_ref[0, :, h * dH:(h + 1) * dH] = ctx.astype(o_ref.dtype)


def attention(qkv, add_mask, n_heads):
    """qkv: [B, S, 3H] (fused projection, no head split in XLA);
    add_mask: [B, 1, S] additive (0 / -1e4).  Grid = one batch element per
    step, all heads handled in-kernel; context written as a lane-dense
    [B, S, H] block (no merge_heads transpose, no extra HBM round trips).
    TODO(synk): for long S (>=~1k), switch to a flash-style kv-tile online
    softmax instead of whole-S score blocks."""
    B, S, H3 = qkv.shape
    H = H3 // 3
    return pl.pallas_call(
        functools.partial(_attn_kernel, n_heads=n_heads),
        out_shape=jax.ShapeDtypeStruct((B, S, H), qkv.dtype),
        grid_spec=pltpu.PrefetchScalarGridSpec(
            num_scalar_prefetch=0,
            grid=(B,),
            in_specs=[
                pl.BlockSpec((1, S, H3), lambda b: (b, 0, 0)),
                pl.BlockSpec((1, 1, S), lambda b: (b, 0, 0)),
            ],
            out_specs=pl.BlockSpec((1, S, H), lambda b: (b, 0, 0)),
        ),
        compiler_params=pltpu.CompilerParams(
            dimension_semantics=("parallel",),
            vmem_limit_bytes=VMEM_LIMIT),
    )(qkv, add_mask)


# ----------------------- fused pooler (tanh) + regression head ----------------

def _pooler_head_kernel(cls_ref, pw_ref, pb_ref, hw_ref, hb_ref, o_ref):
    pooled = jnp.tanh(
        jnp.dot(cls_ref[...], pw_ref[...], preferred_element_type=jnp.float32)
        + pb_ref[...])                                            # (B, H) f32
    score = jnp.sum(pooled * hw_ref[...], axis=-1, keepdims=True) + hb_ref[...]
    o_ref[...] = score.astype(o_ref.dtype)


def pooler_head(cls, pool_w, pool_b, head_w_row, head_b):
    """tanh(cls @ pool_w + pool_b) @ head_w + head_b for the selected head only.
    One tiny launch; 'pooled' never leaves VMEM."""
    B, H = cls.shape
    return pl.pallas_call(
        _pooler_head_kernel,
        out_shape=jax.ShapeDtypeStruct((B, 1), jnp.float32),
        grid_spec=pltpu.PrefetchScalarGridSpec(
            num_scalar_prefetch=0,
            grid=(1,),
            in_specs=[
                pl.BlockSpec((B, H), lambda i: (0, 0)),
                pl.BlockSpec((H, H), lambda i: (0, 0)),
                pl.BlockSpec((1, H), lambda i: (0, 0)),
                pl.BlockSpec((1, H), lambda i: (0, 0)),
                pl.BlockSpec((1, 1), lambda i: (0, 0)),
            ],
            out_specs=pl.BlockSpec((B, 1), lambda i: (0, 0)),
        ),
        compiler_params=pltpu.CompilerParams(
            dimension_semantics=("arbitrary",),
            vmem_limit_bytes=VMEM_LIMIT),
    )(cls, pool_w, pool_b.reshape(1, H).astype(jnp.float32),
      head_w_row.astype(jnp.float32), head_b.astype(jnp.float32))


# ---------------------------- parameter set-up --------------------------------

def init_params(key, *, vocab=100, hidden=32, num_layers=2, heads=4,
                intermediate=64, max_pos=64, type_vocab=2,
                weight_dtype=jnp.bfloat16):
    keys = iter(jax.random.split(key, 64))

    def n(shape, dtype=weight_dtype):
        return (0.02 * jax.random.normal(next(keys), shape, jnp.float32)).astype(dtype)

    zeros = lambda shape: jnp.zeros(shape, jnp.float32)
    ones = lambda shape: jnp.ones(shape, jnp.float32)

    params = {
        "word_emb": n((vocab, hidden), jnp.float32),
        "pos_emb": n((max_pos, hidden), jnp.float32),
        "type_emb": n((type_vocab, hidden), jnp.float32),
        "emb_ln_g": ones((hidden,)), "emb_ln_b": zeros((hidden,)),
        "layers": [],
        "pool_w": n((hidden, hidden)), "pool_b": zeros((hidden,)),
        # All 5 regression heads stacked as [H, 5]; the requested column is
        # selected before the fused pooler+head kernel (numerically identical
        # to 5 separate Linear(H, 1) modules).
        "heads_w": n((hidden, len(HEAD_NAMES))),
        "heads_b": zeros((len(HEAD_NAMES),)),
    }
    for _ in range(num_layers):
        params["layers"].append({
            # Fused QKV projection weights: [H, 3H] / [3H].
            "qkv_w": n((hidden, 3 * hidden)), "qkv_b": zeros((3 * hidden,)),
            "ao_w": n((hidden, hidden)), "ao_b": zeros((hidden,)),
            "ao_ln_g": ones((hidden,)), "ao_ln_b": zeros((hidden,)),
            "i_w": n((hidden, intermediate)), "i_b": zeros((intermediate,)),
            "o_w": n((intermediate, hidden)), "o_b": zeros((hidden,)),
            "o_ln_g": ones((hidden,)), "o_ln_b": zeros((hidden,)),
        })
    return params


# ------------------------------ forward pass -----------------------------------

def bert_for_quantification(params, input_ids, attention_mask, class_type, num_heads):
    if class_type not in HEAD_NAMES:
        # Message kept identical to the PyTorch reference module.
        raise ValueError(
            "Invalid class_type. Must be one of: Reliability, Privacy, Security.")
    B, S = input_ids.shape
    H = params["pool_w"].shape[0]
    nH = num_heads
    dH = H // nH
    act_dtype = params["pool_w"].dtype          # bf16 activations

    # ---- embeddings (gather is glue, plain JAX) ----
    # TODO(synk): token_type_ids assumed all-zero (PyTorch call never passes them).
    emb = (params["word_emb"][input_ids]
           + params["pos_emb"][None, :S, :]
           + params["type_emb"][0][None, None, :])                     # f32 [B,S,H]
    x = layernorm(emb.reshape(B * S, H), params["emb_ln_g"],
                  params["emb_ln_b"], out_dtype=act_dtype)             # bf16 [B*S,H]

    # ---- additive attention mask kept at [B, 1, S] ----
    add_mask = ((1.0 - attention_mask.astype(jnp.float32)) * -10000.0
                ).reshape(B, 1, S)

    # ---- 1/sqrt(dH) folded into the Q columns of the QKV projection ----
    q_col_scale = jnp.concatenate([
        jnp.full((H,), 1.0 / (dH ** 0.5), jnp.float32),
        jnp.ones((2 * H,), jnp.float32)])

    # ---- transformer encoder layers ----
    for layer in params["layers"]:
        qkv = matmul_bias_scale(x, layer["qkv_w"], layer["qkv_b"],
                                q_col_scale)                           # [B*S, 3H]
        ctx = attention(qkv.reshape(B, S, 3 * H), add_mask, n_heads=nH)  # [B, S, H]
        # Fused: attention output projection + bias + residual + LayerNorm.
        x = matmul_bias_residual_ln(ctx.reshape(B * S, H),
                                    layer["ao_w"], layer["ao_b"], x,
                                    layer["ao_ln_g"], layer["ao_ln_b"])
        # Fused FFN: gelu(x@Wi+bi)@Wo+bo + residual + LayerNorm (I streamed).
        x = ffn_fused(x, layer["i_w"], layer["i_b"], layer["o_w"], layer["o_b"],
                      layer["o_ln_g"], layer["o_ln_b"])

    # ---- pooler (tanh over [CLS]) + selected regression head, one kernel ----
    cls = x.reshape(B, S, H)[:, 0, :]                                   # [B, H]
    idx = HEAD_NAMES.index(class_type)
    head_w_row = params["heads_w"][:, idx].astype(jnp.float32).reshape(1, H)
    head_b = params["heads_b"][idx].astype(jnp.float32).reshape(1, 1)
    return pooler_head(cls, params["pool_w"], params["pool_b"],
                       head_w_row, head_b)                              # [B, 1]


# ----------------------------------- main ---------------------------------------

if __name__ == "__main__":
    key = jax.random.PRNGKey(0)
    pkey, ikey = jax.random.split(key)

    VOCAB, B, S, HIDDEN, HEADS = 100, 2, 8, 32, 4
    params = init_params(pkey, vocab=VOCAB, hidden=HIDDEN, num_layers=2,
                         heads=HEADS, intermediate=64, max_pos=64)

    input_ids = jax.random.randint(ikey, (B, S), 0, VOCAB, dtype=jnp.int32)
    attention_mask = jnp.array([[1] * S, [1] * (S - 2) + [0] * 2], dtype=jnp.int32)

    fwd = jax.jit(bert_for_quantification,
                  static_argnames=("class_type", "num_heads"))
    score = fwd(params, input_ids, attention_mask,
                class_type="Reliability", num_heads=HEADS)
    score = jax.block_until_ready(score)
    assert score.shape == (B, 1), score.shape
    print("KERNEL_OK")
</pallas_src>

<mosaic_0001>
module attributes {stable_mosaic.version = 11 : i64} {
  func.func @_attn_kernel(%arg0: i32, %arg1: memref<1x8x96xbf16, #tpu.memory_space<vmem>>, %arg2: memref<1x1x8xf32, #tpu.memory_space<vmem>>, %arg3: memref<1x8x32xbf16, #tpu.memory_space<vmem>>) attributes {dimension_semantics = [#tpu.dimension_semantics<parallel>], iteration_bounds = array<i64: 2>, scalar_prefetch = 0 : i64, scratch_operands = 0 : i64, tpu.core_type = #tpu.core_type<tc>, window_params = [{transform_indices = @transform_0, window_bounds = array<i64: 1, 8, 96>}, {transform_indices = @transform_1, window_bounds = array<i64: 1, 1, 8>}, {transform_indices = @transform_2, window_bounds = array<i64: 1, 8, 32>}]} {
    %c0 = arith.constant 0 : index
    %c0_0 = arith.constant 0 : index
    %c0_1 = arith.constant 0 : index
    %0 = vector.load %arg2[%c0, %c0_0, %c0_1] : memref<1x1x8xf32, #tpu.memory_space<vmem>>, vector<1x1x8xf32>
    %1 = vector.shape_cast %0 : vector<1x1x8xf32> to vector<1x8xf32>
    %c0_2 = arith.constant 0 : index
    %c0_3 = arith.constant 0 : index
    %c0_4 = arith.constant 0 : index
    %2 = vector.load %arg1[%c0_2, %c0_3, %c0_4] : memref<1x8x96xbf16, #tpu.memory_space<vmem>>, vector<1x8x8xbf16>
    %3 = vector.shape_cast %2 : vector<1x8x8xbf16> to vector<8x8xbf16>
    %c0_5 = arith.constant 0 : index
    %c0_6 = arith.constant 0 : index
    %c32 = arith.constant 32 : index
    %4 = vector.load %arg1[%c0_5, %c0_6, %c32] : memref<1x8x96xbf16, #tpu.memory_space<vmem>>, vector<1x8x8xbf16>
    %5 = vector.shape_cast %4 : vector<1x8x8xbf16> to vector<8x8xbf16>
    %c0_7 = arith.constant 0 : index
    %c0_8 = arith.constant 0 : index
    %c64 = arith.constant 64 : index
    %6 = vector.load %arg1[%c0_7, %c0_8, %c64] : memref<1x8x96xbf16, #tpu.memory_space<vmem>>, vector<1x8x8xbf16>
    %7 = vector.shape_cast %6 : vector<1x8x8xbf16> to vector<8x8xbf16>
    "tpu.trace_start"() <{level = 10 : i32, message = "qd,kd->qk"}> : () -> ()
    %cst = arith.constant dense<0.000000e+00> : vector<8x8xf32>
    %8 = tpu.matmul %3, %5, %cst {dimension_numbers = #tpu.dot_dimension_numbers<[1], [1], [0], [0], [0, 0, 1, 0], [], []>} : vector<8x8xbf16>, vector<8x8xbf16>, vector<8x8xf32> -> vector<8x8xf32>
    "tpu.trace_stop"() : () -> ()
    %9 = vector.broadcast %1 : vector<1x8xf32> to vector<8x8xf32>
    %10 = arith.addf %8, %9 : vector<8x8xf32>
    %cst_9 = arith.constant dense<0xFF800000> : vector<8xf32>
    %11 = vector.multi_reduction <maximumf>, %10, %cst_9 [1] : vector<8x8xf32> to vector<8xf32>
    %12 = vector.shape_cast %11 : vector<8xf32> to vector<8x1xf32>
    %13 = vector.broadcast %12 : vector<8x1xf32> to vector<8x8xf32>
    %14 = arith.subf %10, %13 : vector<8x8xf32>
    %15 = math.exp %14 : vector<8x8xf32>
    %cst_10 = arith.constant dense<0.000000e+00> : vector<8xf32>
    %16 = vector.multi_reduction <add>, %15, %cst_10 [1] : vector<8x8xf32> to vector<8xf32>
    %17 = vector.shape_cast %16 : vector<8xf32> to vector<8x1xf32>
    %18 = tpu.reciprocal %17 {approx = true} : vector<8x1xf32> -> vector<8x1xf32>
    %19 = vector.broadcast %18 : vector<8x1xf32> to vector<8x8xf32>
    %20 = arith.mulf %15, %19 : vector<8x8xf32>
    %21 = arith.truncf %20 : vector<8x8xf32> to vector<8x8xbf16>
    %cst_11 = arith.constant dense<0.000000e+00> : vector<8x8xf32>
    %22 = tpu.matmul %21, %7, %cst_11 {dimension_numbers = #tpu.dot_dimension_numbers<[1], [0], [0], [1], [0, 0, 1, 1], [], []>} : vector<8x8xbf16>, vector<8x8xbf16>, vector<8x8xf32> -> vector<8x8xf32>
    %23 = arith.truncf %22 : vector<8x8xf32> to vector<8x8xbf16>
    %c0_12 = arith.constant 0 : index
    %c0_13 = arith.constant 0 : index
    %c0_14 = arith.constant 0 : index
    %24 = vector.load %arg3[%c0_12, %c0_13, %c0_14] : memref<1x8x32xbf16, #tpu.memory_space<vmem>>, vector<1x8x8xbf16>
    %25 = vector.shape_cast %24 : vector<1x8x8xbf16> to vector<8x8xbf16>
    %26 = vector.shape_cast %23 : vector<8x8xbf16> to vector<1x8x8xbf16>
    tpu.vector_store %arg3[%c0_12, %c0_13, %c0_14], %26 {strides = array<i32>} : memref<1x8x32xbf16, #tpu.memory_space<vmem>>, vector<1x8x8xbf16>,
    %c0_15 = arith.constant 0 : index
    %c0_16 = arith.constant 0 : index
    %c8 = arith.constant 8 : index
    %27 = vector.load %arg1[%c0_15, %c0_16, %c8] : memref<1x8x96xbf16, #tpu.memory_space<vmem>>, vector<1x8x8xbf16>
    %28 = vector.shape_cast %27 : vector<1x8x8xbf16> to vector<8x8xbf16>
    %c0_17 = arith.constant 0 : index
    %c0_18 = arith.constant 0 : index
    %c40 = arith.constant 40 : index
    %29 = vector.load %arg1[%c0_17, %c0_18, %c40] : memref<1x8x96xbf16, #tpu.memory_space<vmem>>, vector<1x8x8xbf16>
    %30 = vector.shape_cast %29 : vector<1x8x8xbf16> to vector<8x8xbf16>
    %c0_19 = arith.constant 0 : index
    %c0_20 = arith.constant 0 : index
    %c72 = arith.constant 72 : index
    %31 = vector.load %arg1[%c0_19, %c0_20, %c72] : memref<1x8x96xbf16, #tpu.memory_space<vmem>>, vector<1x8x8xbf16>
    %32 = vector.shape_cast %31 : vector<1x8x8xbf16> to vector<8x8xbf16>
    "tpu.trace_start"() <{level = 10 : i32, message = "qd,kd->qk"}> : () -> ()
    %cst_21 = arith.constant dense<0.000000e+00> : vector<8x8xf32>
    %33 = tpu.matmul %28, %30, %cst_21 {dimension_numbers = #tpu.dot_dimension_numbers<[1], [1], [0], [0], [0, 0, 1, 0], [], []>} : vector<8x8xbf16>, vector<8x8xbf16>, vector<8x8xf32> -> vector<8x8xf32>
    "tpu.trace_stop"() : () -> ()
    %34 = vector.broadcast %1 : vector<1x8xf32> to vector<8x8xf32>
    %35 = arith.addf %33, %34 : vector<8x8xf32>
    %cst_22 = arith.constant dense<0xFF800000> : vector<8xf32>
    %36 = vector.multi_reduction <maximumf>, %35, %cst_22 [1] : vector<8x8xf32> to vector<8xf32>
    %37 = vector.shape_cast %36 : vector<8xf32> to vector<8x1xf32>
    %38 = vector.broadcast %37 : vector<8x1xf32> to vector<8x8xf32>
    %39 = arith.subf %35, %38 : vector<8x8xf32>
    %40 = math.exp %39 : vector<8x8xf32>
    %cst_23 = arith.constant dense<0.000000e+00> : vector<8xf32>
    %41 = vector.multi_reduction <add>, %40, %cst_23 [1] : vector<8x8xf32> to vector<8xf32>
    %42 = vector.shape_cast %41 : vector<8xf32> to vector<8x1xf32>
    %43 = tpu.reciprocal %42 {approx = true} : vector<8x1xf32> -> vector<8x1xf32>
    %44 = vector.broadcast %43 : vector<8x1xf32> to vector<8x8xf32>
    %45 = arith.mulf %40, %44 : vector<8x8xf32>
    %46 = arith.truncf %45 : vector<8x8xf32> to vector<8x8xbf16>
    %cst_24 = arith.constant dense<0.000000e+00> : vector<8x8xf32>
    %47 = tpu.matmul %46, %32, %cst_24 {dimension_numbers = #tpu.dot_dimension_numbers<[1], [0], [0], [1], [0, 0, 1, 1], [], []>} : vector<8x8xbf16>, vector<8x8xbf16>, vector<8x8xf32> -> vector<8x8xf32>
    %48 = arith.truncf %47 : vector<8x8xf32> to vector<8x8xbf16>
    %c0_25 = arith.constant 0 : index
    %c0_26 = arith.constant 0 : index
    %c8_27 = arith.constant 8 : index
    %49 = vector.load %arg3[%c0_25, %c0_26, %c8_27] : memref<1x8x32xbf16, #tpu.memory_space<vmem>>, vector<1x8x8xbf16>
    %50 = vector.shape_cast %49 : vector<1x8x8xbf16> to vector<8x8xbf16>
    %51 = vector.shape_cast %48 : vector<8x8xbf16> to vector<1x8x8xbf16>
    tpu.vector_store %arg3[%c0_25, %c0_26, %c8_27], %51 {strides = array<i32>} : memref<1x8x32xbf16, #tpu.memory_space<vmem>>, vector<1x8x8xbf16>,
    %c0_28 = arith.constant 0 : index
    %c0_29 = arith.constant 0 : index
    %c16 = arith.constant 16 : index
    %52 = vector.load %arg1[%c0_28, %c0_29, %c16] : memref<1x8x96xbf16, #tpu.memory_space<vmem>>, vector<1x8x8xbf16>
    %53 = vector.shape_cast %52 : vector<1x8x8xbf16> to vector<8x8xbf16>
    %c0_30 = arith.constant 0 : index
    %c0_31 = arith.constant 0 : index
    %c48 = arith.constant 48 : index
    %54 = vector.load %arg1[%c0_30, %c0_31, %c48] : memref<1x8x96xbf16, #tpu.memory_space<vmem>>, vector<1x8x8xbf16>
    %55 = vector.shape_cast %54 : vector<1x8x8xbf16> to vector<8x8xbf16>
    %c0_32 = arith.constant 0 : index
    %c0_33 = arith.constant 0 : index
    %c80 = arith.constant 80 : index
    %56 = vector.load %arg1[%c0_32, %c0_33, %c80] : memref<1x8x96xbf16, #tpu.memory_space<vmem>>, vector<1x8x8xbf16>
    %57 = vector.shape_cast %56 : vector<1x8x8xbf16> to vector<8x8xbf16>
    "tpu.trace_start"() <{level = 10 : i32, message = "qd,kd->qk"}> : () -> ()
    %cst_34 = arith.constant dense<0.000000e+00> : vector<8x8xf32>
    %58 = tpu.matmul %53, %55, %cst_34 {dimension_numbers = #tpu.dot_dimension_numbers<[1], [1], [0], [0], [0, 0, 1, 0], [], []>} : vector<8x8xbf16>, vector<8x8xbf16>, vector<8x8xf32> -> vector<8x8xf32>
    "tpu.trace_stop"() : () -> ()
    %59 = vector.broadcast %1 : vector<1x8xf32> to vector<8x8xf32>
    %60 = arith.addf %58, %59 : vector<8x8xf32>
    %cst_35 = arith.constant dense<0xFF800000> : vector<8xf32>
    %61 = vector.multi_reduction <maximumf>, %60, %cst_35 [1] : vector<8x8xf32> to vector<8xf32>
    %62 = vector.shape_cast %61 : vector<8xf32> to vector<8x1xf32>
    %63 = vector.broadcast %62 : vector<8x1xf32> to vector<8x8xf32>
    %64 = arith.subf %60, %63 : vector<8x8xf32>
    %65 = math.exp %64 : vector<8x8xf32>
    %cst_36 = arith.constant dense<0.000000e+00> : vector<8xf32>
    %66 = vector.multi_reduction <add>, %65, %cst_36 [1] : vector<8x8xf32> to vector<8xf32>
    %67 = vector.shape_cast %66 : vector<8xf32> to vector<8x1xf32>
    %68 = tpu.reciprocal %67 {approx = true} : vector<8x1xf32> -> vector<8x1xf32>
    %69 = vector.broadcast %68 : vector<8x1xf32> to vector<8x8xf32>
    %70 = arith.mulf %65, %69 : vector<8x8xf32>
    %71 = arith.truncf %70 : vector<8x8xf32> to vector<8x8xbf16>
    %cst_37 = arith.constant dense<0.000000e+00> : vector<8x8xf32>
    %72 = tpu.matmul %71, %57, %cst_37 {dimension_numbers = #tpu.dot_dimension_numbers<[1], [0], [0], [1], [0, 0, 1, 1], [], []>} : vector<8x8xbf16>, vector<8x8xbf16>, vector<8x8xf32> -> vector<8x8xf32>
    %73 = arith.truncf %72 : vector<8x8xf32> to vector<8x8xbf16>
    %c0_38 = arith.constant 0 : index
    %c0_39 = arith.constant 0 : index
    %c16_40 = arith.constant 16 : index
    %74 = vector.load %arg3[%c0_38, %c0_39, %c16_40] : memref<1x8x32xbf16, #tpu.memory_space<vmem>>, vector<1x8x8xbf16>
    %75 = vector.shape_cast %74 : vector<1x8x8xbf16> to vector<8x8xbf16>
    %76 = vector.shape_cast %73 : vector<8x8xbf16> to vector<1x8x8xbf16>
    tpu.vector_store %arg3[%c0_38, %c0_39, %c16_40], %76 {strides = array<i32>} : memref<1x8x32xbf16, #tpu.memory_space<vmem>>, vector<1x8x8xbf16>,
    %c0_41 = arith.constant 0 : index
    %c0_42 = arith.constant 0 : index
    %c24 = arith.constant 24 : index
    %77 = vector.load %arg1[%c0_41, %c0_42, %c24] : memref<1x8x96xbf16, #tpu.memory_space<vmem>>, vector<1x8x8xbf16>
    %78 = vector.shape_cast %77 : vector<1x8x8xbf16> to vector<8x8xbf16>
    %c0_43 = arith.constant 0 : index
    %c0_44 = arith.constant 0 : index
    %c56 = arith.constant 56 : index
    %79 = vector.load %arg1[%c0_43, %c0_44, %c56] : memref<1x8x96xbf16, #tpu.memory_space<vmem>>, vector<1x8x8xbf16>
    %80 = vector.shape_cast %79 : vector<1x8x8xbf16> to vector<8x8xbf16>
    %c0_45 = arith.constant 0 : index
    %c0_46 = arith.constant 0 : index
    %c88 = arith.constant 88 : index
    %81 = vector.load %arg1[%c0_45, %c0_46, %c88] : memref<1x8x96xbf16, #tpu.memory_space<vmem>>, vector<1x8x8xbf16>
    %82 = vector.shape_cast %81 : vector<1x8x8xbf16> to vector<8x8xbf16>
    "tpu.trace_start"() <{level = 10 : i32, message = "qd,kd->qk"}> : () -> ()
    %cst_47 = arith.constant dense<0.000000e+00> : vector<8x8xf32>
    %83 = tpu.matmul %78, %80, %cst_47 {dimension_numbers = #tpu.dot_dimension_numbers<[1], [1], [0], [0], [0, 0, 1, 0], [], []>} : vector<8x8xbf16>, vector<8x8xbf16>, vector<8x8xf32> -> vector<8x8xf32>
    "tpu.trace_stop"() : () -> ()
    %84 = vector.broadcast %1 : vector<1x8xf32> to vector<8x8xf32>
    %85 = arith.addf %83, %84 : vector<8x8xf32>
    %cst_48 = arith.constant dense<0xFF800000> : vector<8xf32>
    %86 = vector.multi_reduction <maximumf>, %85, %cst_48 [1] : vector<8x8xf32> to vector<8xf32>
    %87 = vector.shape_cast %86 : vector<8xf32> to vector<8x1xf32>
    %88 = vector.broadcast %87 : vector<8x1xf32> to vector<8x8xf32>
    %89 = arith.subf %85, %88 : vector<8x8xf32>
    %90 = math.exp %89 : vector<8x8xf32>
    %cst_49 = arith.constant dense<0.000000e+00> : vector<8xf32>
    %91 = vector.multi_reduction <add>, %90, %cst_49 [1] : vector<8x8xf32> to vector<8xf32>
    %92 = vector.shape_cast %91 : vector<8xf32> to vector<8x1xf32>
    %93 = tpu.reciprocal %92 {approx = true} : vector<8x1xf32> -> vector<8x1xf32>
    %94 = vector.broadcast %93 : vector<8x1xf32> to vector<8x8xf32>
    %95 = arith.mulf %90, %94 : vector<8x8xf32>
    %96 = arith.truncf %95 : vector<8x8xf32> to vector<8x8xbf16>
    %cst_50 = arith.constant dense<0.000000e+00> : vector<8x8xf32>
    %97 = tpu.matmul %96, %82, %cst_50 {dimension_numbers = #tpu.dot_dimension_numbers<[1], [0], [0], [1], [0, 0, 1, 1], [], []>} : vector<8x8xbf16>, vector<8x8xbf16>, vector<8x8xf32> -> vector<8x8xf32>
    %98 = arith.truncf %97 : vector<8x8xf32> to vector<8x8xbf16>
    %c0_51 = arith.constant 0 : index
    %c0_52 = arith.constant 0 : index
    %c24_53 = arith.constant 24 : index
    %99 = vector.load %arg3[%c0_51, %c0_52, %c24_53] : memref<1x8x32xbf16, #tpu.memory_space<vmem>>, vector<1x8x8xbf16>
    %100 = vector.shape_cast %99 : vector<1x8x8xbf16> to vector<8x8xbf16>
    %101 = vector.shape_cast %98 : vector<8x8xbf16> to vector<1x8x8xbf16>
    tpu.vector_store %arg3[%c0_51, %c0_52, %c24_53], %101 {strides = array<i32>} : memref<1x8x32xbf16, #tpu.memory_space<vmem>>, vector<1x8x8xbf16>,
    return
  }
  func.func @transform_0(%arg0: i32) -> (i32, i32, i32) {
    %c0_i32 = arith.constant 0 : i32
    %c0_i32_0 = arith.constant 0 : i32
    %c0_i32_1 = arith.constant 0 : i32
    return %arg0, %c0_i32, %c0_i32_0 : i32, i32, i32
  }
  func.func @transform_1(%arg0: i32) -> (i32, i32, i32) {
    %c0_i32 = arith.constant 0 : i32
    %c0_i32_0 = arith.constant 0 : i32
    %c0_i32_1 = arith.constant 0 : i32
    return %arg0, %c0_i32, %c0_i32_0 : i32, i32, i32
  }
  func.func @transform_2(%arg0: i32) -> (i32, i32, i32) {
    %c0_i32 = arith.constant 0 : i32
    %c0_i32_0 = arith.constant 0 : i32
    %c0_i32_1 = arith.constant 0 : i32
    return %arg0, %c0_i32, %c0_i32_0 : i32, i32, i32
  }
}

module attributes {stable_mosaic.version = 11 : i64} {
  func.func @_ln_kernel(%arg0: i32, %arg1: memref<8x32xf32, #tpu.memory_space<vmem>>, %arg2: memref<1x32xf32, #tpu.memory_space<vmem>>, %arg3: memref<1x32xf32, #tpu.memory_space<vmem>>, %arg4: memref<8x32xbf16, #tpu.memory_space<vmem>>) attributes {dimension_semantics = [#tpu.dimension_semantics<parallel>], iteration_bounds = array<i64: 2>, scalar_prefetch = 0 : i64, scratch_operands = 0 : i64, tpu.core_type = #tpu.core_type<tc>, window_params = [{transform_indices = @transform_0, window_bounds = array<i64: 8, 32>}, {pipeline_mode = #tpu.pipeline_mode<synchronous>, transform_indices = @transform_1, window_bounds = array<i64: 1, 32>}, {pipeline_mode = #tpu.pipeline_mode<synchronous>, transform_indices = @transform_2, window_bounds = array<i64: 1, 32>}, {transform_indices = @transform_3, window_bounds = array<i64: 8, 32>}]} {
    %c0 = arith.constant 0 : index
    %c0_0 = arith.constant 0 : index
    %0 = vector.load %arg1[%c0, %c0_0] : memref<8x32xf32, #tpu.memory_space<vmem>>, vector<8x32xf32>
    %cst = arith.constant dense<0.000000e+00> : vector<8xf32>
    %1 = vector.multi_reduction <add>, %0, %cst [1] : vector<8x32xf32> to vector<8xf32>
    %2 = vector.shape_cast %1 : vector<8xf32> to vector<8x1xf32>
    %cst_1 = arith.constant 3.200000e+01 : f32
    %3 = vector.broadcast %cst_1 : f32 to vector<8x1xf32>
    %4 = arith.divf %2, %3 : vector<8x1xf32>
    %5 = vector.broadcast %4 : vector<8x1xf32> to vector<8x32xf32>
    %6 = arith.subf %0, %5 : vector<8x32xf32>
    %7 = arith.mulf %6, %6 : vector<8x32xf32>
    %cst_2 = arith.constant dense<0.000000e+00> : vector<8xf32>
    %8 = vector.multi_reduction <add>, %7, %cst_2 [1] : vector<8x32xf32> to vector<8xf32>
    %9 = vector.shape_cast %8 : vector<8xf32> to vector<8x1xf32>
    %cst_3 = arith.constant 3.200000e+01 : f32
    %10 = vector.broadcast %cst_3 : f32 to vector<8x1xf32>
    %11 = arith.divf %9, %10 : vector<8x1xf32>
    %cst_4 = arith.constant 9.99999996E-13 : f32
    %12 = vector.broadcast %cst_4 : f32 to vector<8x1xf32>
    %13 = arith.addf %11, %12 : vector<8x1xf32>
    %14 = math.rsqrt %13 : vector<8x1xf32>
    %15 = vector.broadcast %14 : vector<8x1xf32> to vector<8x32xf32>
    %16 = arith.mulf %6, %15 : vector<8x32xf32>
    %c0_5 = arith.constant 0 : index
    %c0_6 = arith.constant 0 : index
    %17 = vector.load %arg2[%c0_5, %c0_6] : memref<1x32xf32, #tpu.memory_space<vmem>>, vector<1x32xf32>
    %18 = vector.broadcast %17 : vector<1x32xf32> to vector<8x32xf32>
    %19 = arith.mulf %16, %18 : vector<8x32xf32>
    %c0_7 = arith.constant 0 : index
    %c0_8 = arith.constant 0 : index
    %20 = vector.load %arg3[%c0_7, %c0_8] : memref<1x32xf32, #tpu.memory_space<vmem>>, vector<1x32xf32>
    %21 = vector.broadcast %20 : vector<1x32xf32> to vector<8x32xf32>
    %22 = arith.addf %19, %21 : vector<8x32xf32>
    %23 = arith.truncf %22 : vector<8x32xf32> to vector<8x32xbf16>
    %c0_9 = arith.constant 0 : index
    %c0_10 = arith.constant 0 : index
    %24 = vector.load %arg4[%c0_9, %c0_10] : memref<8x32xbf16, #tpu.memory_space<vmem>>, vector<8x32xbf16>
    tpu.vector_store %arg4[%c0_9, %c0_10], %23 {strides = array<i32>} : memref<8x32xbf16, #tpu.memory_space<vmem>>, vector<8x32xbf16>,
    return
  }
  func.func @transform_0(%arg0: i32) -> (i32, i32) {
    %c0_i32 = arith.constant 0 : i32
    %c0_i32_0 = arith.constant 0 : i32
    return %arg0, %c0_i32 : i32, i32
  }
  func.func @transform_1(%arg0: i32) -> (i32, i32) {
    %c0_i32 = arith.constant 0 : i32
    %c0_i32_0 = arith.constant 0 : i32
    %c0_i32_1 = arith.constant 0 : i32
    return %c0_i32, %c0_i32_0 : i32, i32
  }
  func.func @transform_2(%arg0: i32) -> (i32, i32) {
    %c0_i32 = arith.constant 0 : i32
    %c0_i32_0 = arith.constant 0 : i32
    %c0_i32_1 = arith.constant 0 : i32
    return %c0_i32, %c0_i32_0 : i32, i32
  }
  func.func @transform_3(%arg0: i32) -> (i32, i32) {
    %c0_i32 = arith.constant 0 : i32
    %c0_i32_0 = arith.constant 0 : i32
    return %arg0, %c0_i32 : i32, i32
  }
}

module attributes {stable_mosaic.version = 11 : i64} {
  func.func @_matmul_bias_scale_kernel(%arg0: i32, %arg1: i32, %arg2: i32, %arg3: memref<8x32xbf16, #tpu.memory_space<vmem>>, %arg4: memref<32x96xbf16, #tpu.memory_space<vmem>>, %arg5: memref<1x96xf32, #tpu.memory_space<vmem>>, %arg6: memref<1x96xf32, #tpu.memory_space<vmem>>, %arg7: memref<8x96xbf16, #tpu.memory_space<vmem>>, %arg8: memref<8x96xf32, #tpu.memory_space<vmem>>) attributes {dimension_semantics = [#tpu.dimension_semantics<parallel>, #tpu.dimension_semantics<parallel>, #tpu.dimension_semantics<arbitrary>], iteration_bounds = array<i64: 2, 1, 1>, scalar_prefetch = 0 : i64, scratch_operands = 1 : i64, tpu.core_type = #tpu.core_type<tc>, window_params = [{transform_indices = @transform_0, window_bounds = array<i64: 8, 32>}, {transform_indices = @transform_1, window_bounds = array<i64: 32, 96>}, {transform_indices = @transform_2, window_bounds = array<i64: 1, 96>}, {transform_indices = @transform_3, window_bounds = array<i64: 1, 96>}, {transform_indices = @transform_4, window_bounds = array<i64: 8, 96>}]} {
    %c0_i32 = arith.constant 0 : i32
    %0 = arith.cmpi eq, %arg2, %c0_i32 : i32
    %1 = arith.extui %0 : i1 to i32
    %c0_i32_0 = arith.constant 0 : i32
    %2 = arith.cmpi ne, %1, %c0_i32_0 : i32
    scf.if %2 {
      %cst_10 = arith.constant 0.000000e+00 : f32
      %12 = vector.broadcast %cst_10 : f32 to vector<8x96xf32>
      %c0_11 = arith.constant 0 : index
      %c0_12 = arith.constant 0 : index
      %13 = vector.load %arg8[%c0_11, %c0_12] : memref<8x96xf32, #tpu.memory_space<vmem>>, vector<8x96xf32>
      tpu.vector_store %arg8[%c0_11, %c0_12], %12 {strides = array<i32>} : memref<8x96xf32, #tpu.memory_space<vmem>>, vector<8x96xf32>,
    } else {
    }
    %c0 = arith.constant 0 : index
    %c0_1 = arith.constant 0 : index
    %3 = vector.load %arg8[%c0, %c0_1] : memref<8x96xf32, #tpu.memory_space<vmem>>, vector<8x96xf32>
    %c0_2 = arith.constant 0 : index
    %c0_3 = arith.constant 0 : index
    %4 = vector.load %arg3[%c0_2, %c0_3] : memref<8x32xbf16, #tpu.memory_space<vmem>>, vector<8x32xbf16>
    %c0_4 = arith.constant 0 : index
    %c0_5 = arith.constant 0 : index
    %5 = vector.load %arg4[%c0_4, %c0_5] : memref<32x96xbf16, #tpu.memory_space<vmem>>, vector<32x96xbf16>
    %cst = arith.constant dense<0.000000e+00> : vector<8x96xf32>
    %6 = tpu.matmul %4, %5, %cst {dimension_numbers = #tpu.dot_dimension_numbers<[1], [0], [0], [1], [0, 0, 1, 1], [], []>} : vector<8x32xbf16>, vector<32x96xbf16>, vector<8x96xf32> -> vector<8x96xf32>
    %7 = arith.addf %3, %6 : vector<8x96xf32>
    %c0_6 = arith.constant 0 : index
    %c0_7 = arith.constant 0 : index
    %8 = vector.load %arg8[%c0_6, %c0_7] : memref<8x96xf32, #tpu.memory_space<vmem>>, vector<8x96xf32>
    tpu.vector_store %arg8[%c0_6, %c0_7], %7 {strides = array<i32>} : memref<8x96xf32, #tpu.memory_space<vmem>>, vector<8x96xf32>,
    %c0_i32_8 = arith.constant 0 : i32
    %9 = arith.cmpi eq, %arg2, %c0_i32_8 : i32
    %10 = arith.extui %9 : i1 to i32
    %c0_i32_9 = arith.constant 0 : i32
    %11 = arith.cmpi ne, %10, %c0_i32_9 : i32
    scf.if %11 {
      %c0_10 = arith.constant 0 : index
      %c0_11 = arith.constant 0 : index
      %12 = vector.load %arg8[%c0_10, %c0_11] : memref<8x96xf32, #tpu.memory_space<vmem>>, vector<8x96xf32>
      %c0_12 = arith.constant 0 : index
      %c0_13 = arith.constant 0 : index
      %13 = vector.load %arg5[%c0_12, %c0_13] : memref<1x96xf32, #tpu.memory_space<vmem>>, vector<1x96xf32>
      %14 = vector.broadcast %13 : vector<1x96xf32> to vector<8x96xf32>
      %15 = arith.addf %12, %14 : vector<8x96xf32>
      %c0_14 = arith.constant 0 : index
      %c0_15 = arith.constant 0 : index
      %16 = vector.load %arg6[%c0_14, %c0_15] : memref<1x96xf32, #tpu.memory_space<vmem>>, vector<1x96xf32>
      %17 = vector.broadcast %16 : vector<1x96xf32> to vector<8x96xf32>
      %18 = arith.mulf %15, %17 : vector<8x96xf32>
      %19 = arith.truncf %18 : vector<8x96xf32> to vector<8x96xbf16>
      %c0_16 = arith.constant 0 : index
      %c0_17 = arith.constant 0 : index
      %20 = vector.load %arg7[%c0_16, %c0_17] : memref<8x96xbf16, #tpu.memory_space<vmem>>, vector<8x96xbf16>
      tpu.vector_store %arg7[%c0_16, %c0_17], %19 {strides = array<i32>} : memref<8x96xbf16, #tpu.memory_space<vmem>>, vector<8x96xbf16>,
    } else {
    }
    return
  }
  func.func @transform_0(%arg0: i32, %arg1: i32, %arg2: i32) -> (i32, i32) {
    %c0_i32 = arith.constant 0 : i32
    return %arg0, %arg2 : i32, i32
  }
  func.func @transform_1(%arg0: i32, %arg1: i32, %arg2: i32) -> (i32, i32) {
    %c0_i32 = arith.constant 0 : i32
    return %arg2, %arg1 : i32, i32
  }
  func.func @transform_2(%arg0: i32, %arg1: i32, %arg2: i32) -> (i32, i32) {
    %c0_i32 = arith.constant 0 : i32
    %c0_i32_0 = arith.constant 0 : i32
    return %c0_i32, %arg1 : i32, i32
  }
  func.func @transform_3(%arg0: i32, %arg1: i32, %arg2: i32) -> (i32, i32) {
    %c0_i32 = arith.constant 0 : i32
    %c0_i32_0 = arith.constant 0 : i32
    return %c0_i32, %arg1 : i32, i32
  }
  func.func @transform_4(%arg0: i32, %arg1: i32, %arg2: i32) -> (i32, i32) {
    %c0_i32 = arith.constant 0 : i32
    return %arg0, %arg1 : i32, i32
  }
}

module attributes {stable_mosaic.version = 11 : i64} {
  func.func @_matmul_res_ln_kernel(%arg0: i32, %arg1: i32, %arg2: memref<8x32xbf16, #tpu.memory_space<vmem>>, %arg3: memref<32x32xbf16, #tpu.memory_space<vmem>>, %arg4: memref<1x32xf32, #tpu.memory_space<vmem>>, %arg5: memref<8x32xbf16, #tpu.memory_space<vmem>>, %arg6: memref<1x32xf32, #tpu.memory_space<vmem>>, %arg7: memref<1x32xf32, #tpu.memory_space<vmem>>, %arg8: memref<8x32xbf16, #tpu.memory_space<vmem>>, %arg9: memref<8x32xf32, #tpu.memory_space<vmem>>) attributes {dimension_semantics = [#tpu.dimension_semantics<parallel>, #tpu.dimension_semantics<arbitrary>], iteration_bounds = array<i64: 2, 1>, scalar_prefetch = 0 : i64, scratch_operands = 1 : i64, tpu.core_type = #tpu.core_type<tc>, window_params = [{transform_indices = @transform_0, window_bounds = array<i64: 8, 32>}, {transform_indices = @transform_1, window_bounds = array<i64: 32, 32>}, {pipeline_mode = #tpu.pipeline_mode<synchronous>, transform_indices = @transform_2, window_bounds = array<i64: 1, 32>}, {transform_indices = @transform_3, window_bounds = array<i64: 8, 32>}, {pipeline_mode = #tpu.pipeline_mode<synchronous>, transform_indices = @transform_4, window_bounds = array<i64: 1, 32>}, {pipeline_mode = #tpu.pipeline_mode<synchronous>, transform_indices = @transform_5, window_bounds = array<i64: 1, 32>}, {transform_indices = @transform_6, window_bounds = array<i64: 8, 32>}]} {
    %c0_i32 = arith.constant 0 : i32
    %0 = arith.cmpi eq, %arg1, %c0_i32 : i32
    %1 = arith.extui %0 : i1 to i32
    %c0_i32_0 = arith.constant 0 : i32
    %2 = arith.cmpi ne, %1, %c0_i32_0 : i32
    scf.if %2 {
      %cst_10 = arith.constant 0.000000e+00 : f32
      %12 = vector.broadcast %cst_10 : f32 to vector<8x32xf32>
      %c0_11 = arith.constant 0 : index
      %c0_12 = arith.constant 0 : index
      %13 = vector.load %arg9[%c0_11, %c0_12] : memref<8x32xf32, #tpu.memory_space<vmem>>, vector<8x32xf32>
      tpu.vector_store %arg9[%c0_11, %c0_12], %12 {strides = array<i32>} : memref<8x32xf32, #tpu.memory_space<vmem>>, vector<8x32xf32>,
    } else {
    }
    %c0 = arith.constant 0 : index
    %c0_1 = arith.constant 0 : index
    %3 = vector.load %arg9[%c0, %c0_1] : memref<8x32xf32, #tpu.memory_space<vmem>>, vector<8x32xf32>
    %c0_2 = arith.constant 0 : index
    %c0_3 = arith.constant 0 : index
    %4 = vector.load %arg2[%c0_2, %c0_3] : memref<8x32xbf16, #tpu.memory_space<vmem>>, vector<8x32xbf16>
    %c0_4 = arith.constant 0 : index
    %c0_5 = arith.constant 0 : index
    %5 = vector.load %arg3[%c0_4, %c0_5] : memref<32x32xbf16, #tpu.memory_space<vmem>>, vector<32x32xbf16>
    %cst = arith.constant dense<0.000000e+00> : vector<8x32xf32>
    %6 = tpu.matmul %4, %5, %cst {dimension_numbers = #tpu.dot_dimension_numbers<[1], [0], [0], [1], [0, 0, 1, 1], [], []>} : vector<8x32xbf16>, vector<32x32xbf16>, vector<8x32xf32> -> vector<8x32xf32>
    %7 = arith.addf %3, %6 : vector<8x32xf32>
    %c0_6 = arith.constant 0 : index
    %c0_7 = arith.constant 0 : index
    %8 = vector.load %arg9[%c0_6, %c0_7] : memref<8x32xf32, #tpu.memory_space<vmem>>, vector<8x32xf32>
    tpu.vector_store %arg9[%c0_6, %c0_7], %7 {strides = array<i32>} : memref<8x32xf32, #tpu.memory_space<vmem>>, vector<8x32xf32>,
    %c0_i32_8 = arith.constant 0 : i32
    %9 = arith.cmpi eq, %arg1, %c0_i32_8 : i32
    %10 = arith.extui %9 : i1 to i32
    %c0_i32_9 = arith.constant 0 : i32
    %11 = arith.cmpi ne, %10, %c0_i32_9 : i32
    scf.if %11 {
      %c0_10 = arith.constant 0 : index
      %c0_11 = arith.constant 0 : index
      %12 = vector.load %arg9[%c0_10, %c0_11] : memref<8x32xf32, #tpu.memory_space<vmem>>, vector<8x32xf32>
      %c0_12 = arith.constant 0 : index
      %c0_13 = arith.constant 0 : index
      %13 = vector.load %arg4[%c0_12, %c0_13] : memref<1x32xf32, #tpu.memory_space<vmem>>, vector<1x32xf32>
      %14 = vector.broadcast %13 : vector<1x32xf32> to vector<8x32xf32>
      %15 = arith.addf %12, %14 : vector<8x32xf32>
      %c0_14 = arith.constant 0 : index
      %c0_15 = arith.constant 0 : index
      %16 = vector.load %arg5[%c0_14, %c0_15] : memref<8x32xbf16, #tpu.memory_space<vmem>>, vector<8x32xbf16>
      %17 = arith.extf %16 : vector<8x32xbf16> to vector<8x32xf32>
      %18 = arith.addf %15, %17 : vector<8x32xf32>
      %cst_16 = arith.constant dense<0.000000e+00> : vector<8xf32>
      %19 = vector.multi_reduction <add>, %18, %cst_16 [1] : vector<8x32xf32> to vector<8xf32>
      %20 = vector.shape_cast %19 : vector<8xf32> to vector<8x1xf32>
      %cst_17 = arith.constant 3.200000e+01 : f32
      %21 = vector.broadcast %cst_17 : f32 to vector<8x1xf32>
      %22 = arith.divf %20, %21 : vector<8x1xf32>
      %23 = vector.broadcast %22 : vector<8x1xf32> to vector<8x32xf32>
      %24 = arith.subf %18, %23 : vector<8x32xf32>
      %25 = arith.mulf %24, %24 : vector<8x32xf32>
      %cst_18 = arith.constant dense<0.000000e+00> : vector<8xf32>
      %26 = vector.multi_reduction <add>, %25, %cst_18 [1] : vector<8x32xf32> to vector<8xf32>
      %27 = vector.shape_cast %26 : vector<8xf32> to vector<8x1xf32>
      %cst_19 = arith.constant 3.200000e+01 : f32
      %28 = vector.broadcast %cst_19 : f32 to vector<8x1xf32>
      %29 = arith.divf %27, %28 : vector<8x1xf32>
      %cst_20 = arith.constant 9.99999996E-13 : f32
      %30 = vector.broadcast %cst_20 : f32 to vector<8x1xf32>
      %31 = arith.addf %29, %30 : vector<8x1xf32>
      %32 = math.rsqrt %31 : vector<8x1xf32>
      %33 = vector.broadcast %32 : vector<8x1xf32> to vector<8x32xf32>
      %34 = arith.mulf %24, %33 : vector<8x32xf32>
      %c0_21 = arith.constant 0 : index
      %c0_22 = arith.constant 0 : index
      %35 = vector.load %arg6[%c0_21, %c0_22] : memref<1x32xf32, #tpu.memory_space<vmem>>, vector<1x32xf32>
      %36 = vector.broadcast %35 : vector<1x32xf32> to vector<8x32xf32>
      %37 = arith.mulf %34, %36 : vector<8x32xf32>
      %c0_23 = arith.constant 0 : index
      %c0_24 = arith.constant 0 : index
      %38 = vector.load %arg7[%c0_23, %c0_24] : memref<1x32xf32, #tpu.memory_space<vmem>>, vector<1x32xf32>
      %39 = vector.broadcast %38 : vector<1x32xf32> to vector<8x32xf32>
      %40 = arith.addf %37, %39 : vector<8x32xf32>
      %41 = arith.truncf %40 : vector<8x32xf32> to vector<8x32xbf16>
      %c0_25 = arith.constant 0 : index
      %c0_26 = arith.constant 0 : index
      %42 = vector.load %arg8[%c0_25, %c0_26] : memref<8x32xbf16, #tpu.memory_space<vmem>>, vector<8x32xbf16>
      tpu.vector_store %arg8[%c0_25, %c0_26], %41 {strides = array<i32>} : memref<8x32xbf16, #tpu.memory_space<vmem>>, vector<8x32xbf16>,
    } else {
    }
    return
  }
  func.func @transform_0(%arg0: i32, %arg1: i32) -> (i32, i32) {
    %c0_i32 = arith.constant 0 : i32
    return %arg0, %arg1 : i32, i32
  }
  func.func @transform_1(%arg0: i32, %arg1: i32) -> (i32, i32) {
    %c0_i32 = arith.constant 0 : i32
    %c0_i32_0 = arith.constant 0 : i32
    return %arg1, %c0_i32 : i32, i32
  }
  func.func @transform_2(%arg0: i32, %arg1: i32) -> (i32, i32) {
    %c0_i32 = arith.constant 0 : i32
    %c0_i32_0 = arith.constant 0 : i32
    %c0_i32_1 = arith.constant 0 : i32
    return %c0_i32, %c0_i32_0 : i32, i32
  }
  func.func @transform_3(%arg0: i32, %arg1: i32) -> (i32, i32) {
    %c0_i32 = arith.constant 0 : i32
    %c0_i32_0 = arith.constant 0 : i32
    return %arg0, %c0_i32 : i32, i32
  }
  func.func @transform_4(%arg0: i32, %arg1: i32) -> (i32, i32) {
    %c0_i32 = arith.constant 0 : i32
    %c0_i32_0 = arith.constant 0 : i32
    %c0_i32_1 = arith.constant 0 : i32
    return %c0_i32, %c0_i32_0 : i32, i32
  }
  func.func @transform_5(%arg0: i32, %arg1: i32) -> (i32, i32) {
    %c0_i32 = arith.constant 0 : i32
    %c0_i32_0 = arith.constant 0 : i32
    %c0_i32_1 = arith.constant 0 : i32
    return %c0_i32, %c0_i32_0 : i32, i32
  }
  func.func @transform_6(%arg0: i32, %arg1: i32) -> (i32, i32) {
    %c0_i32 = arith.constant 0 : i32
    %c0_i32_0 = arith.constant 0 : i32
    return %arg0, %c0_i32 : i32, i32
  }
}

module attributes {stable_mosaic.version = 11 : i64} {
  func.func @_ffn_kernel(%arg0: i32, %arg1: i32, %arg2: memref<8x32xbf16, #tpu.memory_space<vmem>>, %arg3: memref<32x64xbf16, #tpu.memory_space<vmem>>, %arg4: memref<1x64xf32, #tpu.memory_space<vmem>>, %arg5: memref<64x32xbf16, #tpu.memory_space<vmem>>, %arg6: memref<1x32xf32, #tpu.memory_space<vmem>>, %arg7: memref<1x32xf32, #tpu.memory_space<vmem>>, %arg8: memref<1x32xf32, #tpu.memory_space<vmem>>, %arg9: memref<8x32xbf16, #tpu.memory_space<vmem>>, %arg10: memref<8x32xf32, #tpu.memory_space<vmem>>) attributes {dimension_semantics = [#tpu.dimension_semantics<parallel>, #tpu.dimension_semantics<arbitrary>], iteration_bounds = array<i64: 2, 1>, scalar_prefetch = 0 : i64, scratch_operands = 1 : i64, tpu.core_type = #tpu.core_type<tc>, window_params = [{transform_indices = @transform_0, window_bounds = array<i64: 8, 32>}, {transform_indices = @transform_1, window_bounds = array<i64: 32, 64>}, {transform_indices = @transform_2, window_bounds = array<i64: 1, 64>}, {transform_indices = @transform_3, window_bounds = array<i64: 64, 32>}, {pipeline_mode = #tpu.pipeline_mode<synchronous>, transform_indices = @transform_4, window_bounds = array<i64: 1, 32>}, {pipeline_mode = #tpu.pipeline_mode<synchronous>, transform_indices = @transform_5, window_bounds = array<i64: 1, 32>}, {pipeline_mode = #tpu.pipeline_mode<synchronous>, transform_indices = @transform_6, window_bounds = array<i64: 1, 32>}, {transform_indices = @transform_7, window_bounds = array<i64: 8, 32>}]} {
    %c0_i32 = arith.constant 0 : i32
    %0 = arith.cmpi eq, %arg1, %c0_i32 : i32
    %1 = arith.extui %0 : i1 to i32
    %c0_i32_0 = arith.constant 0 : i32
    %2 = arith.cmpi ne, %1, %c0_i32_0 : i32
    scf.if %2 {
      %cst_19 = arith.constant 0.000000e+00 : f32
      %31 = vector.broadcast %cst_19 : f32 to vector<8x32xf32>
      %c0_20 = arith.constant 0 : index
      %c0_21 = arith.constant 0 : index
      %32 = vector.load %arg10[%c0_20, %c0_21] : memref<8x32xf32, #tpu.memory_space<vmem>>, vector<8x32xf32>
      tpu.vector_store %arg10[%c0_20, %c0_21], %31 {strides = array<i32>} : memref<8x32xf32, #tpu.memory_space<vmem>>, vector<8x32xf32>,
    } else {
    }
    %c0 = arith.constant 0 : index
    %c0_1 = arith.constant 0 : index
    %3 = vector.load %arg2[%c0, %c0_1] : memref<8x32xbf16, #tpu.memory_space<vmem>>, vector<8x32xbf16>
    %c0_2 = arith.constant 0 : index
    %c0_3 = arith.constant 0 : index
    %4 = vector.load %arg3[%c0_2, %c0_3] : memref<32x64xbf16, #tpu.memory_space<vmem>>, vector<32x64xbf16>
    %cst = arith.constant dense<0.000000e+00> : vector<8x64xf32>
    %5 = tpu.matmul %3, %4, %cst {dimension_numbers = #tpu.dot_dimension_numbers<[1], [0], [0], [1], [0, 0, 1, 1], [], []>} : vector<8x32xbf16>, vector<32x64xbf16>, vector<8x64xf32> -> vector<8x64xf32>
    %c0_4 = arith.constant 0 : index
    %c0_5 = arith.constant 0 : index
    %6 = vector.load %arg4[%c0_4, %c0_5] : memref<1x64xf32, #tpu.memory_space<vmem>>, vector<1x64xf32>
    %7 = vector.broadcast %6 : vector<1x64xf32> to vector<8x64xf32>
    %8 = arith.addf %5, %7 : vector<8x64xf32>
    %cst_6 = arith.constant 5.000000e-01 : f32
    %9 = vector.broadcast %cst_6 : f32 to vector<8x64xf32>
    %10 = arith.mulf %9, %8 : vector<8x64xf32>
    %cst_7 = arith.constant 4.471500e-02 : f32
    %11 = vector.broadcast %cst_7 : f32 to vector<8x64xf32>
    %12 = arith.mulf %11, %8 : vector<8x64xf32>
    %13 = arith.mulf %12, %8 : vector<8x64xf32>
    %14 = arith.mulf %13, %8 : vector<8x64xf32>
    %15 = arith.addf %8, %14 : vector<8x64xf32>
    %cst_8 = arith.constant 0.797884583 : f32
    %16 = vector.broadcast %cst_8 : f32 to vector<8x64xf32>
    %17 = arith.mulf %16, %15 : vector<8x64xf32>
    %18 = math.tanh %17 : vector<8x64xf32>
    %cst_9 = arith.constant 1.000000e+00 : f32
    %19 = vector.broadcast %cst_9 : f32 to vector<8x64xf32>
    %20 = arith.addf %19, %18 : vector<8x64xf32>
    %21 = arith.mulf %10, %20 : vector<8x64xf32>
    %c0_10 = arith.constant 0 : index
    %c0_11 = arith.constant 0 : index
    %22 = vector.load %arg10[%c0_10, %c0_11] : memref<8x32xf32, #tpu.memory_space<vmem>>, vector<8x32xf32>
    %23 = arith.truncf %21 : vector<8x64xf32> to vector<8x64xbf16>
    %c0_12 = arith.constant 0 : index
    %c0_13 = arith.constant 0 : index
    %24 = vector.load %arg5[%c0_12, %c0_13] : memref<64x32xbf16, #tpu.memory_space<vmem>>, vector<64x32xbf16>
    %cst_14 = arith.constant dense<0.000000e+00> : vector<8x32xf32>
    %25 = tpu.matmul %23, %24, %cst_14 {dimension_numbers = #tpu.dot_dimension_numbers<[1], [0], [0], [1], [0, 0, 1, 1], [], []>} : vector<8x64xbf16>, vector<64x32xbf16>, vector<8x32xf32> -> vector<8x32xf32>
    %26 = arith.addf %22, %25 : vector<8x32xf32>
    %c0_15 = arith.constant 0 : index
    %c0_16 = arith.constant 0 : index
    %27 = vector.load %arg10[%c0_15, %c0_16] : memref<8x32xf32, #tpu.memory_space<vmem>>, vector<8x32xf32>
    tpu.vector_store %arg10[%c0_15, %c0_16], %26 {strides = array<i32>} : memref<8x32xf32, #tpu.memory_space<vmem>>, vector<8x32xf32>,
    %c0_i32_17 = arith.constant 0 : i32
    %28 = arith.cmpi eq, %arg1, %c0_i32_17 : i32
    %29 = arith.extui %28 : i1 to i32
    %c0_i32_18 = arith.constant 0 : i32
    %30 = arith.cmpi ne, %29, %c0_i32_18 : i32
    scf.if %30 {
      %c0_19 = arith.constant 0 : index
      %c0_20 = arith.constant 0 : index
      %31 = vector.load %arg10[%c0_19, %c0_20] : memref<8x32xf32, #tpu.memory_space<vmem>>, vector<8x32xf32>
      %c0_21 = arith.constant 0 : index
      %c0_22 = arith.constant 0 : index
      %32 = vector.load %arg6[%c0_21, %c0_22] : memref<1x32xf32, #tpu.memory_space<vmem>>, vector<1x32xf32>
      %33 = vector.broadcast %32 : vector<1x32xf32> to vector<8x32xf32>
      %34 = arith.addf %31, %33 : vector<8x32xf32>
      %35 = arith.extf %3 : vector<8x32xbf16> to vector<8x32xf32>
      %36 = arith.addf %34, %35 : vector<8x32xf32>
      %cst_23 = arith.constant dense<0.000000e+00> : vector<8xf32>
      %37 = vector.multi_reduction <add>, %36, %cst_23 [1] : vector<8x32xf32> to vector<8xf32>
      %38 = vector.shape_cast %37 : vector<8xf32> to vector<8x1xf32>
      %cst_24 = arith.constant 3.200000e+01 : f32
      %39 = vector.broadcast %cst_24 : f32 to vector<8x1xf32>
      %40 = arith.divf %38, %39 : vector<8x1xf32>
      %41 = vector.broadcast %40 : vector<8x1xf32> to vector<8x32xf32>
      %42 = arith.subf %36, %41 : vector<8x32xf32>
      %43 = arith.mulf %42, %42 : vector<8x32xf32>
      %cst_25 = arith.constant dense<0.000000e+00> : vector<8xf32>
      %44 = vector.multi_reduction <add>, %43, %cst_25 [1] : vector<8x32xf32> to vector<8xf32>
      %45 = vector.shape_cast %44 : vector<8xf32> to vector<8x1xf32>
      %cst_26 = arith.constant 3.200000e+01 : f32
      %46 = vector.broadcast %cst_26 : f32 to vector<8x1xf32>
      %47 = arith.divf %45, %46 : vector<8x1xf32>
      %cst_27 = arith.constant 9.99999996E-13 : f32
      %48 = vector.broadcast %cst_27 : f32 to vector<8x1xf32>
      %49 = arith.addf %47, %48 : vector<8x1xf32>
      %50 = math.rsqrt %49 : vector<8x1xf32>
      %51 = vector.broadcast %50 : vector<8x1xf32> to vector<8x32xf32>
      %52 = arith.mulf %42, %51 : vector<8x32xf32>
      %c0_28 = arith.constant 0 : index
      %c0_29 = arith.constant 0 : index
      %53 = vector.load %arg7[%c0_28, %c0_29] : memref<1x32xf32, #tpu.memory_space<vmem>>, vector<1x32xf32>
      %54 = vector.broadcast %53 : vector<1x32xf32> to vector<8x32xf32>
      %55 = arith.mulf %52, %54 : vector<8x32xf32>
      %c0_30 = arith.constant 0 : index
      %c0_31 = arith.constant 0 : index
      %56 = vector.load %arg8[%c0_30, %c0_31] : memref<1x32xf32, #tpu.memory_space<vmem>>, vector<1x32xf32>
      %57 = vector.broadcast %56 : vector<1x32xf32> to vector<8x32xf32>
      %58 = arith.addf %55, %57 : vector<8x32xf32>
      %59 = arith.truncf %58 : vector<8x32xf32> to vector<8x32xbf16>
      %c0_32 = arith.constant 0 : index
      %c0_33 = arith.constant 0 : index
      %60 = vector.load %arg9[%c0_32, %c0_33] : memref<8x32xbf16, #tpu.memory_space<vmem>>, vector<8x32xbf16>
      tpu.vector_store %arg9[%c0_32, %c0_33], %59 {strides = array<i32>} : memref<8x32xbf16, #tpu.memory_space<vmem>>, vector<8x32xbf16>,
    } else {
    }
    return
  }
  func.func @transform_0(%arg0: i32, %arg1: i32) -> (i32, i32) {
    %c0_i32 = arith.constant 0 : i32
    %c0_i32_0 = arith.constant 0 : i32
    return %arg0, %c0_i32 : i32, i32
  }
  func.func @transform_1(%arg0: i32, %arg1: i32) -> (i32, i32) {
    %c0_i32 = arith.constant 0 : i32
    %c0_i32_0 = arith.constant 0 : i32
    return %c0_i32, %arg1 : i32, i32
  }
  func.func @transform_2(%arg0: i32, %arg1: i32) -> (i32, i32) {
    %c0_i32 = arith.constant 0 : i32
    %c0_i32_0 = arith.constant 0 : i32
    return %c0_i32, %arg1 : i32, i32
  }
  func.func @transform_3(%arg0: i32, %arg1: i32) -> (i32, i32) {
    %c0_i32 = arith.constant 0 : i32
    %c0_i32_0 = arith.constant 0 : i32
    return %arg1, %c0_i32 : i32, i32
  }
  func.func @transform_4(%arg0: i32, %arg1: i32) -> (i32, i32) {
    %c0_i32 = arith.constant 0 : i32
    %c0_i32_0 = arith.constant 0 : i32
    %c0_i32_1 = arith.constant 0 : i32
    return %c0_i32, %c0_i32_0 : i32, i32
  }
  func.func @transform_5(%arg0: i32, %arg1: i32) -> (i32, i32) {
    %c0_i32 = arith.constant 0 : i32
    %c0_i32_0 = arith.constant 0 : i32
    %c0_i32_1 = arith.constant 0 : i32
    return %c0_i32, %c0_i32_0 : i32, i32
  }
  func.func @transform_6(%arg0: i32, %arg1: i32) -> (i32, i32) {
    %c0_i32 = arith.constant 0 : i32
    %c0_i32_0 = arith.constant 0 : i32
    %c0_i32_1 = arith.constant 0 : i32
    return %c0_i32, %c0_i32_0 : i32, i32
  }
  func.func @transform_7(%arg0: i32, %arg1: i32) -> (i32, i32) {
    %c0_i32 = arith.constant 0 : i32
    %c0_i32_0 = arith.constant 0 : i32
    return %arg0, %c0_i32 : i32, i32
  }
}

module attributes {stable_mosaic.version = 11 : i64} {
  func.func @_pooler_head_kernel(%arg0: i32, %arg1: memref<2x32xbf16, #tpu.memory_space<vmem>>, %arg2: memref<32x32xbf16, #tpu.memory_space<vmem>>, %arg3: memref<1x32xf32, #tpu.memory_space<vmem>>, %arg4: memref<1x32xf32, #tpu.memory_space<vmem>>, %arg5: memref<1x1xf32, #tpu.memory_space<vmem>>, %arg6: memref<2x1xf32, #tpu.memory_space<vmem>>) attributes {dimension_semantics = [#tpu.dimension_semantics<arbitrary>], iteration_bounds = array<i64: 1>, scalar_prefetch = 0 : i64, scratch_operands = 0 : i64, tpu.core_type = #tpu.core_type<tc>, window_params = [{pipeline_mode = #tpu.pipeline_mode<synchronous>, transform_indices = @transform_0, window_bounds = array<i64: 2, 32>}, {pipeline_mode = #tpu.pipeline_mode<synchronous>, transform_indices = @transform_1, window_bounds = array<i64: 32, 32>}, {pipeline_mode = #tpu.pipeline_mode<synchronous>, transform_indices = @transform_2, window_bounds = array<i64: 1, 32>}, {pipeline_mode = #tpu.pipeline_mode<synchronous>, transform_indices = @transform_3, window_bounds = array<i64: 1, 32>}, {pipeline_mode = #tpu.pipeline_mode<synchronous>, transform_indices = @transform_4, window_bounds = array<i64: 1, 1>}, {pipeline_mode = #tpu.pipeline_mode<synchronous>, transform_indices = @transform_5, window_bounds = array<i64: 2, 1>}]} {
    %c0 = arith.constant 0 : index
    %c0_0 = arith.constant 0 : index
    %0 = vector.load %arg1[%c0, %c0_0] : memref<2x32xbf16, #tpu.memory_space<vmem>>, vector<2x32xbf16>
    %c0_1 = arith.constant 0 : index
    %c0_2 = arith.constant 0 : index
    %1 = vector.load %arg2[%c0_1, %c0_2] : memref<32x32xbf16, #tpu.memory_space<vmem>>, vector<32x32xbf16>
    %cst = arith.constant dense<0.000000e+00> : vector<2x32xf32>
    %2 = tpu.matmul %0, %1, %cst {dimension_numbers = #tpu.dot_dimension_numbers<[1], [0], [0], [1], [0, 0, 1, 1], [], []>} : vector<2x32xbf16>, vector<32x32xbf16>, vector<2x32xf32> -> vector<2x32xf32>
    %c0_3 = arith.constant 0 : index
    %c0_4 = arith.constant 0 : index
    %3 = vector.load %arg3[%c0_3, %c0_4] : memref<1x32xf32, #tpu.memory_space<vmem>>, vector<1x32xf32>
    %4 = vector.broadcast %3 : vector<1x32xf32> to vector<2x32xf32>
    %5 = arith.addf %2, %4 : vector<2x32xf32>
    %6 = math.tanh %5 : vector<2x32xf32>
    %c0_5 = arith.constant 0 : index
    %c0_6 = arith.constant 0 : index
    %7 = vector.load %arg4[%c0_5, %c0_6] : memref<1x32xf32, #tpu.memory_space<vmem>>, vector<1x32xf32>
    %8 = vector.broadcast %7 : vector<1x32xf32> to vector<2x32xf32>
    %9 = arith.mulf %6, %8 : vector<2x32xf32>
    %cst_7 = arith.constant dense<0.000000e+00> : vector<2xf32>
    %10 = vector.multi_reduction <add>, %9, %cst_7 [1] : vector<2x32xf32> to vector<2xf32>
    %11 = vector.shape_cast %10 : vector<2xf32> to vector<2x1xf32>
    %c0_8 = arith.constant 0 : index
    %c0_9 = arith.constant 0 : index
    %12 = vector.load %arg5[%c0_8, %c0_9] : memref<1x1xf32, #tpu.memory_space<vmem>>, vector<1x1xf32>
    %13 = vector.broadcast %12 : vector<1x1xf32> to vector<2x1xf32>
    %14 = arith.addf %11, %13 : vector<2x1xf32>
    %c0_10 = arith.constant 0 : index
    %c0_11 = arith.constant 0 : index
    %15 = vector.load %arg6[%c0_10, %c0_11] : memref<2x1xf32, #tpu.memory_space<vmem>>, vector<2x1xf32>
    tpu.vector_store %arg6[%c0_10, %c0_11], %14 {strides = array<i32>} : memref<2x1xf32, #tpu.memory_space<vmem>>, vector<2x1xf32>,
    return
  }
  func.func @transform_0(%arg0: i32) -> (i32, i32) {
    %c0_i32 = arith.constant 0 : i32
    %c0_i32_0 = arith.constant 0 : i32
    %c0_i32_1 = arith.constant 0 : i32
    return %c0_i32, %c0_i32_0 : i32, i32
  }
  func.func @transform_1(%arg0: i32) -> (i32, i32) {
    %c0_i32 = arith.constant 0 : i32
    %c0_i32_0 = arith.constant 0 : i32
    %c0_i32_1 = arith.constant 0 : i32
    return %c0_i32, %c0_i32_0 : i32, i32
  }
  func.func @transform_2(%arg0: i32) -> (i32, i32) {
    %c0_i32 = arith.constant 0 : i32
    %c0_i32_0 = arith.constant 0 : i32
    %c0_i32_1 = arith.constant 0 : i32
    return %c0_i32, %c0_i32_0 : i32, i32
  }
  func.func @transform_3(%arg0: i32) -> (i32, i32) {
    %c0_i32 = arith.constant 0 : i32
    %c0_i32_0 = arith.constant 0 : i32
    %c0_i32_1 = arith.constant 0 : i32
    return %c0_i32, %c0_i32_0 : i32, i32
  }
  func.func @transform_4(%arg0: i32) -> (i32, i32) {
    %c0_i32 = arith.constant 0 : i32
    %c0_i32_0 = arith.constant 0 : i32
    %c0_i32_1 = arith.constant 0 : i32
    return %c0_i32, %c0_i32_0 : i32, i32
  }
  func.func @transform_5(%arg0: i32) -> (i32, i32) {
    %c0_i32 = arith.constant 0 : i32
    %c0_i32_0 = arith.constant 0 : i32
    %c0_i32_1 = arith.constant 0 : i32
    return %c0_i32, %c0_i32_0 : i32, i32
  }
}

</mosaic_0001>

<bundles_post_ra>
// kernel: bert_for_quantification.11
= control target key start
LH: loop header
LB: loop body
LE: loop exit
PB: predicated region body
PF: predicated region fallthrough
CT: control target
= control target key end

     0   :  { %s614_s15 = smov 0   ;;  %s616_s16 = smov 0   ;;  %s661_s0 = inlined_call_operand.vmem [shape: bf16[16,32], index: 0, kind: input, shape index: {}]   ;;  %s662_s1 = inlined_call_operand.vmem [shape: bf16[32,96], index: 1, kind: input, shape index: {}]   ;;  %s663_s2 = inlined_call_operand.vmem [shape: f32[1,96], index: 2, kind: input, shape index: {}]   ;;  %s664_s3 = inlined_call_operand.vmem [shape: f32[1,96], index: 3, kind: input, shape index: {}]   ;;  %s665_s4 = inlined_call_operand.vmem [shape: bf16[16,96], index: 4, kind: output, shape index: {}]  }
   0x1   :  { %s618_s17 = smov 0  }
   0x2 LB: > { %s33_s18 = sadd.s32 1, %s581_s16  ;;  %p514_p0 = scmp.ge.s32.totalorder %s585_s17, 1  ;;  %s585_s17 = sphi %s618_s17, %s14_s17   ;;  %s581_s16 = sphi %s616_s16, %s667_s16   ;;  %s577_s15 = sphi %s614_s15, %s666_s15  }
   0x3   : > { %p35_p1 = scmp.ge.s32.totalorder %s33_s18, 2  ;;  %p219_p2 = scmp.lt.s32.totalorder %s585_s17, 3 }
   0x5   : > { %s669_s18 = smov (%p35_p1, %s33_s18), 0  ;;  %p220_p3 = pnand %p514_p0, %p219_p2 }
   0x6   : > { %p263_p4 = scmp.lt.s32.totalorder (!%p220_p3), %s577_s15, 1 }
   0x7   : > { %223 = sbr.rel (%p220_p3) target bundleno = 231 (0xe7), region = 36 }
   0xc   : > { %vm297_vm0 = vcmask 785408   ;;  %v587_v0 = vmov 0.0   ;;  %v561_v1 = vld [vmem:[%s662_s1 + $0x8] sm:$0xff]   ;;  %vm588_vm1 = vmmov 0   ;;  %v562_v2 = vld [vmem:[%s662_s1] sm:$0xff]   ;;  %s671_s15 = smov (!%p263_p4, %s577_s15), 1 }
   0xd   : > { %298 = vst.msk [vmem:[#allocation2] sm:$0xff] %vm297_vm0, %v587_v0  ;;  %527 = vmatprep.subr.bf16.mxu0 %v587_v0  ;;  %531 = vmatprep.mubr.msk.bf16.mxu0 %vm588_vm1, %v587_v0  ;;  %s515_s23 = sshll.u32 %s671_s15, 2  ;;  %vm317_vm2 = vcmask 261120   ;;  %v520_v10 = vld [vmem:[%s663_s2] ss:$0 sm:$0xff]  ;;  %vm385_vm3 = vcmask 781312  }
   0xe   : > { %528 = vmatpush3.bf16.msra.mxu0 %v561_v1  ;;  %s269_s26 = scalar_lea.vmem %s661_s0, %s515_s23  ;;  %v521_v12 = vld [vmem:[%s664_s3] ss:$0 sm:$0xff]  ;;  %s291_s7 = scalar_lea.vmem %s665_s4, %s515_s23 }
   0xf   : > { %529 = vmatprep.subr.bf16.mxu0 %v587_v0  ;;  %v300_v3 = vld [vmem:[%s269_s26] sm:$0xf] }
  0x12   : > { %530 = vmatpush3.bf16.msra.mxu0 %v562_v2 }
  0x14   : > { %v299_v4 = vld [vmem:[#allocation2] sm:$0xff] }
  0x15   : > { %532 = vmatmul.mubr.msk.bf16.vlgmr.msra.gmra.mxu0 %vm317_vm2, %v300_v3 }
  0xd5   : > { %v355_v5 = vpop.f32.mrf.mxu0 }
  0xd6   : > { %v361_v6 = vadd.f32 %v355_v5, %v299_v4 }
  0xd7   : > { %v533_v7 = vpop.f32.mrf.mxu0 }
  0xd8   : > { %363 = vst.msk [vmem:[#allocation2] sm:$0xff] %vm297_vm0, %v361_v6 }
  0xd9   : > { %v358_v8 = vpop.f32.mrf.mxu0 }
  0xdb   : > { %v534_v9 = vpop.f32.mrf.mxu0 }
  0xdf   : > { %v367_v11 = vld [vmem:[#allocation2] sm:$0xff] }
  0xe0   : > { %v375_v13 = vadd.f32 %v520_v10, %v367_v11 }
  0xe2   : > { %v383_v14 = vmul.f32 %v521_v12, %v375_v13 }
  0xe4   : > { %v384_v15 = vpack.c.bf16 %v383_v14, %v383_v14 }
  0xe6   : > { %386 = vst.msk [vmem:[%s291_s7] sm:$0xf] %vm385_vm3, %v384_v15 }
  0xe7 PF: > { %s14_s17 = sadd.s32 1, %s585_s17   ;;  %s666_s15 = smov %s581_s16 }
  0xe8   : > { %p11_p5 = scmp.ge.s32.totalorder %s14_s17, 4   ;;  %s667_s16 = smov %s669_s18 }
  0xea   :  { %13 = sbr.rel (!%p11_p5) target bundleno = 2 (0x2), region = 83 }

// kernel: bert_for_quantification.13
= control target key start
LH: loop header
LB: loop body
LE: loop exit
PB: predicated region body
PF: predicated region fallthrough
CT: control target
= control target key end

     0   :  { %s639_s21 = smov 0   ;;  %s641_s22 = smov 0   ;;  %s700_s0 = inlined_call_operand.vmem [shape: bf16[16,32], index: 0, kind: input, shape index: {}]   ;;  %s701_s1 = inlined_call_operand.vmem [shape: bf16[32,32], index: 1, kind: input, shape index: {}]   ;;  %s702_s2 = inlined_call_operand.vmem [shape: f32[1,32], index: 2, kind: input, shape index: {}]   ;;  %s703_s3 = inlined_call_operand.vmem [shape: bf16[16,32], index: 3, kind: input, shape index: {}]   ;;  %s704_s4 = inlined_call_operand.vmem [shape: f32[1,32], index: 4, kind: input, shape index: {}]   ;;  %s705_s5 = inlined_call_operand.vmem [shape: f32[1,32], index: 5, kind: input, shape index: {}]   ;;  %s706_s6 = inlined_call_operand.vmem [shape: bf16[16,32], index: 6, kind: output, shape index: {}]  }
   0x1   :  { %s643_s23 = smov 0  }
   0x2 LB: > { %s28_s24 = sadd.s32 1, %s596_s22  ;;  %p525_p0 = scmp.ge.s32.totalorder %s600_s23, 1  ;;  %s600_s23 = sphi %s643_s23, %s16_s23   ;;  %s596_s22 = sphi %s641_s22, %s708_s22   ;;  %s592_s21 = sphi %s639_s21, %s707_s21  }
   0x3   : > { %p30_p1 = scmp.ge.s32.totalorder %s28_s24, 2  ;;  %p248_p2 = scmp.lt.s32.totalorder %s600_s23, 3 }
   0x5   : > { %s710_s24 = smov (%p30_p1, %s28_s24), 0  ;;  %p249_p3 = pnand %p525_p0, %p248_p2 }
   0x6   : > { %p288_p4 = scmp.lt.s32.totalorder (!%p249_p3), %s592_s21, 1 }
   0x7   : > { %252 = sbr.rel (%p249_p3) target bundleno = 539 (0x21b), region = 44 }
   0xc   : > { %v574_v0 = vld [vmem:[%s701_s1 + $0x8] sm:$0xff]   ;;  %v602_v1 = vmov 0.0   ;;  %v575_v2 = vld [vmem:[%s701_s1] sm:$0xff]   ;;  %vm603_vm0 = vmmov 0   ;;  %vm314_vm1 = vcmask 261120   ;;  %s712_s21 = smov (!%p288_p4, %s592_s21), 1 }
   0xd   : > { %540 = vmatprep.subr.bf16.mxu0 %v602_v1  ;;  %544 = vmatprep.mubr.msk.bf16.mxu0 %vm603_vm0, %v602_v1  ;;  %315 = vst.msk [vmem:[#allocation2] sm:$0xff] %vm314_vm1, %v602_v1  ;;  %s664_s29 = sshll.u32 %s712_s21, 2  ;;  %v532_v11 = vld [vmem:[%s702_s2] ss:$0 sm:$0xff]  ;;  %vm426_vm2 = vcmask 257024  }
   0xe   : > { %541 = vmatpush3.bf16.msra.mxu0 %v574_v0  ;;  %s294_s8 = scalar_lea.vmem %s700_s0, %s664_s29  ;;  %s304_s11 = scalar_lea.vmem %s703_s3, %s664_s29  ;;  %v533_v26 = vld [vmem:[%s704_s4] ss:$0 sm:$0xff] }
   0xf   : > { %542 = vmatprep.subr.bf16.mxu0 %v602_v1  ;;  %v317_v3 = vld [vmem:[%s294_s8] sm:$0xf]  ;;  %s308_s20 = scalar_lea.vmem %s706_s6, %s664_s29 }
  0x10   : > { %v392_v10 = vld [vmem:[%s304_s11] sm:$0xf] }
  0x11   : > { %v393_v12 = vunpack.c.l.bf16 %v392_v10  ;;  %v534_v28 = vld [vmem:[%s705_s5] ss:$0 sm:$0xff] }
  0x12   : > { %543 = vmatpush3.bf16.msra.mxu0 %v575_v2 }
  0x14   : > { %v316_v4 = vld [vmem:[#allocation2] sm:$0xff] }
  0x15   : > { %545 = vmatmul.mubr.msk.bf16.vlgmr.msra.gmra.mxu0 %vm314_vm1, %v317_v3 }
  0xd5   : > { %v372_v5 = vpop.f32.mrf.mxu0 }
  0xd6   : > { %v378_v6 = vadd.f32 %v372_v5, %v316_v4 }
  0xd7   : > { %v546_v7 = vpop.f32.mrf.mxu0 }
  0xd8   : > { %379 = vst.msk [vmem:[#allocation2] sm:$0xff] %vm314_vm1, %v378_v6 }
  0xd9   : > { %v375_v8 = vpop.f32.mrf.mxu0 }
  0xdb   : > { %v547_v9 = vpop.f32.mrf.mxu0 }
  0xdf   : > { %v383_v13 = vld [vmem:[#allocation2] sm:$0xff] }
  0xe0   : > { %v391_v14 = vadd.f32 %v532_v11, %v383_v13 }
  0xe2   : > { %v394_v15 = vadd.f32 %v393_v12, %v391_v14 }
  0xe4   : > { %v395_v16 = vsel %vm314_vm1, %v394_v15, 0.0 }
  0xe5   : > { %396 = vadd.xlane.f32.xlu0 %v395_v16 }
 0x16e   : > { %v397_v17 = vpop.xlane.xlu0 %396 }
 0x16f   : > { %v399_v18 = vmul.f32 0.03125, %v397_v17 }
 0x171   : > { %v400_v19 = vsub.f32 %v394_v15, %v399_v18 }
 0x173   : > { %v401_v20 = vmul.f32 %v400_v19, %v400_v19 }
 0x175   : > { %v402_v21 = vsel %vm314_vm1, %v401_v20, 0.0 }
 0x176   : > { %403 = vadd.xlane.f32.xlu0 %v402_v21 }
 0x1ff   : > { %v404_v22 = vpop.xlane.xlu0 %403 }
 0x200   : > { %v405_v23 = vmul.f32 0.03125, %v404_v22 }
 0x202   : > { %v406_v24 = vadd.f32 1e-12, %v405_v23 }
 0x204   : > { %576 = vrsqrt.f32 %v406_v24 }
 0x211   : > { %v577_v25 = vpop.eup %576 }
 0x212   : > { %v408_v27 = vmul.f32 %v577_v25, %v400_v19 }
 0x214   : > { %v416_v29 = vmul.f32 %v533_v26, %v408_v27 }
 0x216   : > { %v424_v30 = vadd.f32 %v534_v28, %v416_v29 }
 0x218   : > { %v425_v31 = vpack.c.bf16 %v424_v30, %v424_v30 }
 0x21a   : > { %427 = vst.msk [vmem:[%s308_s20] sm:$0xf] %vm426_vm2, %v425_v31 }
 0x21b PF: > { %s16_s23 = sadd.s32 1, %s600_s23   ;;  %s707_s21 = smov %s596_s22 }
 0x21c   : > { %p13_p5 = scmp.ge.s32.totalorder %s16_s23, 4   ;;  %s708_s22 = smov %s710_s24 }
 0x21e   :  { %15 = sbr.rel (!%p13_p5) target bundleno = 2 (0x2), region = 88 }

// kernel: bert_for_quantification.10
= control target key start
LH: loop header
LB: loop body
LE: loop exit
PB: predicated region body
PF: predicated region fallthrough
CT: control target
= control target key end

     0   :  { %s303_s12 = smov 0   ;;  %s326_s0 = inlined_call_operand.vmem [shape: f32[16,32], index: 0, kind: input, shape index: {}]   ;;  %s327_s1 = inlined_call_operand.vmem [shape: f32[1,32], index: 1, kind: input, shape index: {}]   ;;  %s328_s2 = inlined_call_operand.vmem [shape: f32[1,32], index: 2, kind: input, shape index: {}]   ;;  %s329_s3 = inlined_call_operand.vmem [shape: bf16[16,32], index: 3, kind: output, shape index: {}]  }
   0x1 LB: > { %s254_s13 = sadd.s32 4294967295, %s281_s12   ;;  %p258_p0 = scmp.ge.s32.totalorder %s281_s12, 1  ;;  %s281_s12 = sphi %s303_s12, %s13_s12  }
   0x2   : > { %p136_p1 = scmp.lt.s32.totalorder %s281_s12, 3 }
   0x4   : > { %p137_p2 = pnand %p258_p0, %p136_p1 }
   0x5   : > { %p158_p3 = scmp.lt.s32.totalorder (!%p137_p2), %s254_s13, 1 }
   0x6   : > { %140 = sbr.rel (%p137_p2) target bundleno = 326 (0x146), region = 32 }
   0xb   : > { %s331_s13 = smov (!%p158_p3, %s254_s13), 1  ;;  %vm167_vm0 = vcmask 261120   ;;  %v261_v11 = vld [vmem:[%s327_s1] ss:$0 sm:$0xff]  ;;  %vm199_vm1 = vcmask 257024  }
   0xc   : > { %s259_s14 = sshll.u32 %s331_s13, 3  ;;  %v262_v13 = vld [vmem:[%s328_s2] ss:$0 sm:$0xff]  ;;  %s260_s22 = sshll.u32 %s331_s13, 2 }
   0xd   : > { %s161_s17 = scalar_lea.vmem %s326_s0, %s259_s14  ;;  %s165_s25 = scalar_lea.vmem %s329_s3, %s260_s22 }
   0xe   : > { %v166_v0 = vld [vmem:[%s161_s17] sm:$0xff] }
   0xf   : > { %v168_v1 = vsel %vm167_vm0, %v166_v0, 0.0 }
  0x10   : > { %169 = vadd.xlane.f32.xlu0 %v168_v1 }
  0x99   : > { %v170_v2 = vpop.xlane.xlu0 %169 }
  0x9a   : > { %v172_v3 = vmul.f32 0.03125, %v170_v2 }
  0x9c   : > { %v173_v4 = vsub.f32 %v166_v0, %v172_v3 }
  0x9e   : > { %v174_v5 = vmul.f32 %v173_v4, %v173_v4 }
  0xa0   : > { %v175_v6 = vsel %vm167_vm0, %v174_v5, 0.0 }
  0xa1   : > { %176 = vadd.xlane.f32.xlu0 %v175_v6 }
 0x12a   : > { %v177_v7 = vpop.xlane.xlu0 %176 }
 0x12b   : > { %v178_v8 = vmul.f32 0.03125, %v177_v7 }
 0x12d   : > { %v179_v9 = vadd.f32 1e-12, %v178_v8 }
 0x12f   : > { %273 = vrsqrt.f32 %v179_v9 }
 0x13c   : > { %v274_v10 = vpop.eup %273 }
 0x13d   : > { %v181_v12 = vmul.f32 %v274_v10, %v173_v4 }
 0x13f   : > { %v189_v14 = vmul.f32 %v261_v11, %v181_v12 }
 0x141   : > { %v197_v15 = vadd.f32 %v262_v13, %v189_v14 }
 0x143   : > { %v198_v16 = vpack.c.bf16 %v197_v15, %v197_v15 }
 0x145   : > { %200 = vst.msk [vmem:[%s165_s25] sm:$0xf] %vm199_vm1, %v198_v16 }
 0x146 PF: > { %s13_s12 = sadd.s32 1, %s281_s12  }
 0x147   : > { %p10_p4 = scmp.ge.s32.totalorder %s13_s12, 4  }
 0x149   :  { %12 = sbr.rel (!%p10_p4) target bundleno = 1 (0x1), region = 62 }

// kernel: bert_for_quantification.12
= control target key start
LH: loop header
LB: loop body
LE: loop exit
PB: predicated region body
PF: predicated region fallthrough
CT: control target
= control target key end

     0   :  { %s884_s9 = smov 0   ;;  %s993_s0 = inlined_call_operand.vmem [shape: bf16[2,8,96], index: 0, kind: input, shape index: {}]   ;;  %s994_s1 = inlined_call_operand.vmem [shape: f32[2,1,8], index: 1, kind: input, shape index: {}]   ;;  %s995_s2 = inlined_call_operand.vmem [shape: bf16[2,8,32], index: 2, kind: output, shape index: {}]  }
   0x1 LB: > { %s709_s10 = sadd.s32 4294967295, %s851_s9   ;;  %p713_p0 = scmp.ge.s32.totalorder %s851_s9, 1  ;;  %s851_s9 = sphi %s884_s9, %s12_s9  }
   0x2   : > { %p119_p1 = scmp.lt.s32.totalorder %s851_s9, 3 }
   0x4   : > { %p120_p2 = pnand %p713_p0, %p119_p1 }
   0x5   : > { %p142_p3 = scmp.lt.s32.totalorder (!%p120_p2), %s709_s10, 1  ;;  %s855_s15 = smov (!%p120_p2), 96  }
   0x6   : > { %123 = sbr.rel (%p120_p2) target bundleno = 1538 (0x602), region = 28  ;;  %s856_s16 = smov (!%p120_p2), 64  }
   0x7   : > { %s857_s17 = smov (!%p120_p2), 88   ;;  %s858_s21 = smov (!%p120_p2), 72  }
   0x8   : > { %s859_s22 = smov (!%p120_p2), 120   ;;  %s860_s23 = smov (!%p120_p2), 80  }
   0x9   : > { %s861_s24 = smov (!%p120_p2), 112   ;;  %s862_s25 = smov (!%p120_p2), 104  }
   0xa   : > { %s863_s29 = smov (!%p120_p2), 56   ;;  %s864_s30 = smov (!%p120_p2), 48  }
   0xb   : > { %v853_v0 = vmov 0.0   ;;  %vm854_vm0 = vmmov 0   ;;  %s997_s10 = smov (!%p142_p3, %s709_s10), 1  ;;  %vm167_vm1 = vcmask 64512   ;;  %vm231_vm2 = vcmask 1043456   ;;  %s865_s3 = smov 40  }
   0xc   : > { %753 = vmatprep.subr.bf16.mxu0 %v853_v0  ;;  %755 = vmatprep.mubr.msk.bf16.mxu0 %vm854_vm0, %v853_v0  ;;  %s714_s11 = sshll.u32 %s997_s10, 2  ;;  %s148_s20 = scalar_lea.vmem %s994_s1, %s997_s10  ;;  %vm276_vm3 = vcmask 60416   ;;  %vm399_vm4 = vcmask 126016   ;;  %vm522_vm5 = vcmask 191616   ;;  %vm645_vm6 = vcmask 257216  }
   0xd   : > { %759 = vmatprep.subr.bf16.mxu1 %v853_v0  ;;  %761 = vmatprep.mubr.msk.bf16.mxu1 %vm854_vm0, %v853_v0  ;;  %s906_s14 = scalar_lea.vmem %s993_s0, %s714_s11  ;;  %v922_v6 = vld [vmem:[%s148_s20] ss:$0 sm:$0xff]  ;;  %s960_s28 = scalar_lea.vmem %s995_s2, %s714_s11 }
   0xe   : > { %v155_v1 = vld [vmem:[%s906_s14] sm:$0xf]  ;;  %s866_s4 = smov 8   ;;  %s867_s5 = smov 16  }
   0xf   : > { %v717_v2 = vcombine.low %v155_v1, %v155_v1  ;;  %v915_v5 = vld [vmem:[%s906_s14] ss:$0 sps:$4 sm:$0xff]   ;;  %s868_s6 = smov 24  }
  0x10   : > { %v927_v13 = vld [vmem:[%s906_s14] ss:$0 sps:$4 sm:$0xff]  }
  0x11   : > { %165 = vrot.lane.b32.xlu0 %v717_v2, %s855_s15  ;;  %226 = vrot.lane.b32.xlu1 %v717_v2, %s856_s16  ;;  %v935_v21 = vld [vmem:[%s906_s14] ss:$0 sps:$4 sm:$0xff]  }
  0x15   : > { %284 = vrot.lane.b32.xlu1 %v915_v5, %s857_s17 }
  0x83   : > { %v166_v3 = vpop.permute.xlu0 %165  ;;  %v227_v14 = vpop.permute.xlu1 %226 }
  0x84   : > { %v172_v4 = vsel %vm167_vm1, %v166_v3, 0  ;;  %v233_v15 = vsel %vm231_vm2, %v227_v14, 0 }
  0x85   : > { %754 = vmatpush3.bf16.xpose.msra.mxu0 %v172_v4  ;;  %760 = vmatpush3.bf16.msra.mxu1 %v233_v15 }
  0x86   : > { %771 = vmatprep.subr.bf16.mxu0 %v853_v0  ;;  %765 = vmatprep.subr.bf16.mxu1 %v853_v0 }
  0x87   : > { %v285_v22 = vpop.permute.xlu1 %284 }
  0x88   : > { %v290_v28 = vsel %vm167_vm1, %v285_v22, 0 }
  0x8c   : > { %756 = vmatmul.mubr.msk.bf16.vlgmr.msra.gmra.mxu0 %vm167_vm1, %v155_v1 }
  0x8d   : > { %773 = vmatprep.mubr.msk.bf16.mxu0 %vm854_vm0, %v853_v0 }
 0x14c   : > { %v208_v7 = vpop.f32.mrf.mxu0 }
 0x14d   : > { %v209_v8 = vadd.f32 %v922_v6, %v208_v7 }
 0x14e   : > { %v757_v9 = vpop.f32.mrf.mxu0 }
 0x14f   : > { %v214_v10 = vsel %vm167_vm1, %v209_v8, -inf }
 0x150   : > { %215 = vmax.xlane.f32.xlu0 %v214_v10  ;;  %v211_v11 = vpop.f32.mrf.mxu0 }
 0x152   : > { %v758_v12 = vpop.f32.mrf.mxu0 }
 0x166   : > { %530 = vrot.lane.b32.xlu0 %v927_v13, %s858_s21 }
 0x1d9   : > { %v216_v16 = vpop.xlane.xlu0 %215 }
 0x1da   : > { %v217_v17 = vsub.f32 %v209_v8, %v216_v16 }
 0x1dc   : > { %v218_v18 = vmul.f32 1.442695, %v217_v17 }
 0x1dd   : > { %v531_v31 = vpop.permute.xlu0 %530 }
 0x1de   : > { %829 = vpow2.f32 %v218_v18  ;;  %v536_v33 = vsel %vm167_vm1, %v531_v31, 0 }
 0x1eb   : > { %v830_v19 = vpop.eup %829 }
 0x1ec   : > { %v220_v20 = vsel %vm167_vm1, %v830_v19, 0.0 }
 0x1ed   : > { %221 = vadd.xlane.f32.xlu1 %v220_v20 }
 0x1fe   : > { %282 = vrot.lane.b32.xlu1 %v915_v5, %s859_s22 }
 0x202   : > { %407 = vrot.lane.b32.xlu1 %v935_v21, %s860_s23 }
 0x206   : > { %405 = vrot.lane.b32.xlu1 %v935_v21, %s861_s24 }
 0x20a   : > { %528 = vrot.lane.b32.xlu1 %v927_v13, %s862_s25 }
 0x276   : > { %v222_v23 = vpop.xlane.xlu1 %221 }
 0x277   : > { %831 = vrcp.f32 %v222_v23 }
 0x27a   : > { %v283_v26 = vpop.permute.xlu1 %282 }
 0x27e   : > { %v408_v29 = vpop.permute.xlu1 %407 }
 0x27f   : > { %v413_v30 = vsel %vm167_vm1, %v408_v29, 0 }
 0x282   : > { %v406_v32 = vpop.permute.xlu1 %405 }
 0x284   : > { %v832_v24 = vpop.eup %831 }
 0x285   : > { %v224_v25 = vmul.f32 %v832_v24, %v830_v19 }
 0x286   : > { %v529_v34 = vpop.permute.xlu1 %528 }
 0x287   : > { %v225_v27 = vpack.c.bf16 %v224_v25, %v224_v25 }
 0x289   : > { %762 = vmatmul.mubr.msk.bf16.vlgmr.msra.gmra.mxu1 %vm167_vm1, %v225_v27 }
 0x28a   : > { %766 = vmatpush3.bf16.xpose.msra.mxu1 %v290_v28  ;;  %767 = vmatprep.mubr.msk.bf16.mxu1 %vm854_vm0, %v853_v0 }
 0x28b   : > { %777 = vmatprep.subr.bf16.mxu1 %v853_v0 }
 0x291   : > { %768 = vmatmul.mubr.msk.bf16.vlgmr.msra.gmra.mxu1 %vm167_vm1, %v283_v26 }
 0x292   : > { %778 = vmatpush3.bf16.xpose.msra.mxu1 %v413_v30  ;;  %779 = vmatprep.mubr.msk.bf16.mxu1 %vm854_vm0, %v853_v0 }
 0x293   : > { %789 = vmatprep.subr.bf16.mxu1 %v853_v0 }
 0x299   : > { %780 = vmatmul.mubr.msk.bf16.vlgmr.msra.gmra.mxu1 %vm167_vm1, %v406_v32 }
 0x29a   : > { %790 = vmatpush3.bf16.xpose.msra.mxu1 %v536_v33  ;;  %791 = vmatprep.mubr.msk.bf16.mxu1 %vm854_vm0, %v853_v0 }
 0x2a1   : > { %792 = vmatmul.mubr.msk.bf16.vlgmr.msra.gmra.mxu1 %vm167_vm1, %v529_v34 }
 0x349   : > { %v269_v35 = vpop.f32.mrf.mxu1 }
 0x34a   : > { %v275_v36 = vpack.c.bf16 %v269_v35, %v269_v35 }
 0x34b   : > { %v763_v37 = vpop.f32.mrf.mxu1 }
 0x34c   : > { %277 = vst.msk [vmem:[%s960_s28] sm:$0xf] %vm276_vm3, %v275_v36 }
 0x34d   : > { %v272_v38 = vpop.f32.mrf.mxu1 }
 0x34f   : > { %v764_v39 = vpop.f32.mrf.mxu1 }
 0x351   : > { %v326_v40 = vpop.f32.mrf.mxu1 }
 0x352   : > { %v327_v41 = vadd.f32 %v922_v6, %v326_v40 }
 0x353   : > { %v769_v42 = vpop.f32.mrf.mxu1 }
 0x354   : > { %v332_v43 = vsel %vm167_vm1, %v327_v41, -inf }
 0x355   : > { %333 = vmax.xlane.f32.xlu1 %v332_v43  ;;  %v329_v44 = vpop.f32.mrf.mxu1 }
 0x357   : > { %v770_v45 = vpop.f32.mrf.mxu1 }
 0x359   : > { %v449_v46 = vpop.f32.mrf.mxu1 }
 0x35a   : > { %v450_v47 = vadd.f32 %v922_v6, %v449_v46 }
 0x35b   : > { %v781_v48 = vpop.f32.mrf.mxu1 }
 0x35c   : > { %v455_v49 = vsel %vm167_vm1, %v450_v47, -inf }
 0x35d   : > { %456 = vmax.xlane.f32.xlu0 %v455_v49  ;;  %v452_v50 = vpop.f32.mrf.mxu1 }
 0x35f   : > { %v782_v51 = vpop.f32.mrf.mxu1 }
 0x361   : > { %v572_v52 = vpop.f32.mrf.mxu1 }
 0x362   : > { %v573_v53 = vadd.f32 %v922_v6, %v572_v52 }
 0x363   : > { %v793_v54 = vpop.f32.mrf.mxu1 }
 0x364   : > { %v578_v55 = vsel %vm167_vm1, %v573_v53, -inf }
 0x365   : > { %579 = vmax.xlane.f32.xlu1 %v578_v55  ;;  %v575_v56 = vpop.f32.mrf.mxu1 }
 0x367   : > { %v794_v57 = vpop.f32.mrf.mxu1 }
 0x3de   : > { %v334_v58 = vpop.xlane.xlu1 %333 }
 0x3df   : > { %v335_v59 = vsub.f32 %v327_v41, %v334_v58 }
 0x3e1   : > { %v336_v60 = vmul.f32 1.442695, %v335_v59 }
 0x3e3   : > { %833 = vpow2.f32 %v336_v60 }
 0x3e6   : > { %v457_v6 = vpop.xlane.xlu0 %456 }
 0x3e7   : > { %v458_v7 = vsub.f32 %v450_v47, %v457_v6 }
 0x3e9   : > { %v459_v8 = vmul.f32 1.442695, %v458_v7 }
 0x3ee   : > { %v580_v61 = vpop.xlane.xlu1 %579 }
 0x3ef   : > { %v581_v62 = vsub.f32 %v573_v53, %v580_v61 }
 0x3f0   : > { %v834_v63 = vpop.eup %833 }
 0x3f1   : > { %v582_v1 = vmul.f32 1.442695, %v581_v62  ;;  %v338_v2 = vsel %vm167_vm1, %v834_v63, 0.0 }
 0x3f2   : > { %339 = vadd.xlane.f32.xlu1 %v338_v2 }
 0x3f3   : > { %835 = vpow2.f32 %v582_v1 }
 0x3f4   : > { %837 = vpow2.f32 %v459_v8 }
 0x400   : > { %v836_v3 = vpop.eup %835 }
 0x401   : > { %v584_v4 = vsel %vm167_vm1, %v836_v3, 0.0  ;;  %v838_v9 = vpop.eup %837 }
 0x402   : > { %585 = vadd.xlane.f32.xlu0 %v584_v4  ;;  %v461_v10 = vsel %vm167_vm1, %v838_v9, 0.0 }
 0x403   : > { %344 = vrot.lane.b32.xlu1 %v915_v5, %s863_s29 }
 0x418   : > { %467 = vrot.lane.b32.xlu0 %v935_v21, %s864_s30 }
 0x427   : > { %462 = vadd.xlane.f32.xlu1 %v461_v10 }
 0x438   : > { %590 = vrot.lane.b32.xlu1 %v927_v13, %s865_s3 }
 0x47b   : > { %v340_v11 = vpop.xlane.xlu1 %339 }
 0x47c   : > { %839 = vrcp.f32 %v340_v11 }
 0x47f   : > { %v345_v12 = vpop.permute.xlu1 %344 }
 0x480   : > { %v350_v14 = vsel %vm231_vm2, %v345_v12, 0 }
 0x481   : > { %772 = vmatpush3.bf16.msra.mxu0 %v350_v14 }
 0x482   : > { %783 = vmatprep.subr.bf16.mxu0 %v853_v0 }
 0x489   : > { %v840_v5 = vpop.eup %839 }
 0x48a   : > { %v342_v15 = vmul.f32 %v840_v5, %v834_v63 }
 0x48b   : > { %v586_v16 = vpop.xlane.xlu0 %585 }
 0x48c   : > { %v343_v17 = vpack.c.bf16 %v342_v15, %v342_v15 }
 0x48e   : > { %774 = vmatmul.mubr.msk.bf16.vlgmr.msra.gmra.mxu0 %vm167_vm1, %v343_v17 }
 0x48f   : > { %v468_v18 = vpop.permute.xlu0 %467  ;;  %785 = vmatprep.mubr.msk.bf16.mxu0 %vm854_vm0, %v853_v0 }
 0x490   : > { %v473_v13 = vsel %vm231_vm2, %v468_v18, 0 }
 0x491   : > { %784 = vmatpush3.bf16.msra.mxu0 %v473_v13 }
 0x492   : > { %795 = vmatprep.subr.bf16.mxu0 %v853_v0 }
 0x4b0   : > { %v463_v19 = vpop.xlane.xlu1 %462 }
 0x4b1   : > { %841 = vrcp.f32 %v463_v19 }
 0x4b2   : > { %843 = vrcp.f32 %v586_v16 }
 0x4b4   : > { %v591_v21 = vpop.permute.xlu1 %590 }
 0x4b5   : > { %v596_v23 = vsel %vm231_vm2, %v591_v21, 0 }
 0x4be   : > { %v842_v20 = vpop.eup %841 }
 0x4bf   : > { %v465_v22 = vmul.f32 %v842_v20, %v838_v9  ;;  %v844_v25 = vpop.eup %843 }
 0x4c0   : > { %v588_v26 = vmul.f32 %v844_v25, %v836_v3 }
 0x4c1   : > { %v466_v24 = vpack.c.bf16 %v465_v22, %v465_v22 }
 0x4c2   : > { %v589_v27 = vpack.c.bf16 %v588_v26, %v588_v26 }
 0x4c3   : > { %786 = vmatmul.mubr.msk.bf16.vlgmr.msra.gmra.mxu0 %vm167_vm1, %v466_v24 }
 0x4c4   : > { %796 = vmatpush3.bf16.msra.mxu0 %v596_v23  ;;  %797 = vmatprep.mubr.msk.bf16.mxu0 %vm854_vm0, %v853_v0 }
 0x4cb   : > { %798 = vmatmul.mubr.msk.bf16.vlgmr.msra.gmra.mxu0 %vm167_vm1, %v589_v27 }
 0x54e   : > { %v386_v28 = vpop.f32.mrf.mxu0 }
 0x54f   : > { %v734_v29 = vpack.c.bf16 %v386_v28, %v386_v28 }
 0x550   : > { %v775_v30 = vpop.f32.mrf.mxu0 }
 0x551   : > { %396 = vrot.lane.b32.xlu1 %v734_v29, %s866_s4 }
 0x552   : > { %v389_v31 = vpop.f32.mrf.mxu0 }
 0x554   : > { %v776_v32 = vpop.f32.mrf.mxu0 }
 0x583   : > { %v509_v33 = vpop.f32.mrf.mxu0 }
 0x584   : > { %v735_v34 = vpack.c.bf16 %v509_v33, %v509_v33 }
 0x585   : > { %v787_v35 = vpop.f32.mrf.mxu0 }
 0x586   : > { %519 = vrot.lane.b32.xlu0 %v735_v34, %s867_s5 }
 0x587   : > { %v512_v36 = vpop.f32.mrf.mxu0 }
 0x589   : > { %v788_v0 = vpop.f32.mrf.mxu0 }
 0x58b   : > { %v632_v37 = vpop.f32.mrf.mxu0 }
 0x58c   : > { %v736_v38 = vpack.c.bf16 %v632_v37, %v632_v37 }
 0x58d   : > { %v799_v39 = vpop.f32.mrf.mxu0 }
 0x58e   : > { %642 = vrot.lane.b32.xlu1 %v736_v38, %s868_s6 }
 0x58f   : > { %v635_v40 = vpop.f32.mrf.mxu0 }
 0x591   : > { %v800_v41 = vpop.f32.mrf.mxu0 }
 0x5c3   : > { %v397_v42 = vpop.permute.xlu1 %396 }
 0x5c4   : > { %400 = vst.msk [vmem:[%s960_s28] sm:$0xf] %vm399_vm4, %v397_v42 }
 0x5f8   : > { %v520_v43 = vpop.permute.xlu0 %519 }
 0x5f9   : > { %523 = vst.msk [vmem:[%s960_s28] sm:$0xf] %vm522_vm5, %v520_v43 }
 0x600   : > { %v643_v44 = vpop.permute.xlu1 %642 }
 0x601   : > { %646 = vst.msk [vmem:[%s960_s28] sm:$0xf] %vm645_vm6, %v643_v44 }
 0x602 PF: > { %s12_s9 = sadd.s32 1, %s851_s9  }
 0x603   : > { %p9_p4 = scmp.ge.s32.totalorder %s12_s9, 4  }
 0x605   :  { %11 = sbr.rel (!%p9_p4) target bundleno = 1 (0x1), region = 61 }

// kernel: bert_for_quantification.19
= control target key start
LH: loop header
LB: loop body
LE: loop exit
PB: predicated region body
PF: predicated region fallthrough
CT: control target
= control target key end

     0   :  { %v141_v0 = vmov 0.0   ;;  %vm142_vm0 = vmmov 0   ;;  %vm47_vm1 = vcmask 261120   ;;  %vm100_vm2 = vcmask 254976   ;;  %s194_s1 = inlined_call_operand.vmem [shape: bf16[32,32], index: 1, kind: input, shape index: {}]   ;;  %s195_s0 = inlined_call_operand.vmem [shape: bf16[2,32], index: 0, kind: input, shape index: {}]   ;;  %s196_s4 = inlined_call_operand.<no memory space> [shape: f32[1,1], index: 4, kind: input, shape index: {}]   ;;  %s197_s2 = inlined_call_operand.vmem [shape: f32[1,32], index: 2, kind: input, shape index: {}]   ;;  %s198_s3 = inlined_call_operand.vmem [shape: f32[1,32], index: 3, kind: input, shape index: {}]   ;;  %s199_s5 = inlined_call_operand.vmem [shape: f32[2,1], index: 5, kind: output, shape index: {}]  }
   0x1   :  { %127 = vmatprep.subr.bf16.mxu0 %v141_v0  ;;  %v137_v1 = vld [vmem:[%s194_s1 + $0x8] sm:$0xff]   ;;  %131 = vmatprep.mubr.msk.bf16.mxu0 %vm142_vm0, %v141_v0  ;;  %v138_v2 = vld [vmem:[%s194_s1] sm:$0xff]   ;;  %v10_v4 = vstv %s196_s4  ;;  %vm112_vm3 = vcmask 1024  }
   0x2   :  { %128 = vmatpush3.bf16.msra.mxu0 %v137_v1  ;;  %v23_v3 = vld [vmem:[%s195_s0] sm:$0x1]  ;;  %11 = vst [vmem:[#allocation2] sm:$0x1] %v10_v4 }
   0x3   :  { %129 = vmatprep.subr.bf16.mxu0 %v141_v0  ;;  %v118_v5 = vld [vmem:[%s197_s2] ss:$0 sm:$0xff] }
   0x4   :  { %v122_v11 = vld [vmem:[%s198_s3] ss:$0 sm:$0xff] }
   0x6   :  { %130 = vmatpush3.bf16.msra.mxu0 %v138_v2 }
   0x9   :  { %132 = vmatmul.mubr.msk.bf16.vlgmr.msra.gmra.mxu0 %vm47_vm1, %v23_v3  ;;  %v123_v15 = vld [vmem:[#allocation2] ss:$0 sm:$0xff] }
  0xc9   :  { %v85_v6 = vpop.f32.mrf.mxu0 }
  0xca   :  { %v86_v7 = vadd.f32 %v118_v5, %v85_v6 }
  0xcb   :  { %v133_v8 = vpop.f32.mrf.mxu0 }
  0xcc   :  { %139 = vtanh.f32 %v86_v7 }
  0xcd   :  { %v88_v9 = vpop.f32.mrf.mxu0 }
  0xcf   :  { %v134_v10 = vpop.f32.mrf.mxu0 }
  0xd9   :  { %v140_v12 = vpop.eup %139 }
  0xda   :  { %v99_v13 = vmul.f32 %v140_v12, %v122_v11 }
  0xdc   :  { %v101_v14 = vsel %vm100_vm2, %v99_v13, 0.0 }
  0xdd   :  { %102 = vadd.xlane.f32.xlu0 %v101_v14 }
 0x166   :  { %v103_v16 = vpop.xlane.xlu0 %102 }
 0x167   :  { %v111_v17 = vadd.f32 %v123_v15, %v103_v16 }
 0x169   :  { %113 = vst.msk [vmem:[%s199_s5] sm:$0x3] %vm112_vm3, %v111_v17 }

// kernel: bert_for_quantification.14
= control target key start
LH: loop header
LB: loop body
LE: loop exit
PB: predicated region body
PF: predicated region fallthrough
CT: control target
= control target key end

     0   :  { %s808_s24 = smov 0   ;;  %s810_s25 = smov 0   ;;  %s883_s0 = inlined_call_operand.vmem [shape: bf16[16,32], index: 0, kind: input, shape index: {}]   ;;  %s884_s1 = inlined_call_operand.vmem [shape: bf16[32,64], index: 1, kind: input, shape index: {}]   ;;  %s885_s2 = inlined_call_operand.vmem [shape: f32[1,64], index: 2, kind: input, shape index: {}]   ;;  %s886_s3 = inlined_call_operand.vmem [shape: bf16[64,32], index: 3, kind: input, shape index: {}]   ;;  %s887_s4 = inlined_call_operand.vmem [shape: f32[1,32], index: 4, kind: input, shape index: {}]   ;;  %s888_s5 = inlined_call_operand.vmem [shape: f32[1,32], index: 5, kind: input, shape index: {}]   ;;  %s889_s6 = inlined_call_operand.vmem [shape: f32[1,32], index: 6, kind: input, shape index: {}]   ;;  %s890_s7 = inlined_call_operand.vmem [shape: bf16[16,32], index: 7, kind: output, shape index: {}]  }
   0x1   :  { %s812_s26 = smov 0  }
   0x2 LB: > { %s29_s27 = sadd.s32 1, %s760_s25  ;;  %p661_p0 = scmp.ge.s32.totalorder %s764_s26, 1  ;;  %s764_s26 = sphi %s812_s26, %s17_s26   ;;  %s760_s25 = sphi %s810_s25, %s892_s25   ;;  %s756_s24 = sphi %s808_s24, %s891_s24  }
   0x3   : > { %p31_p1 = scmp.ge.s32.totalorder %s29_s27, 2  ;;  %p276_p2 = scmp.lt.s32.totalorder %s764_s26, 3 }
   0x5   : > { %s894_s27 = smov (%p31_p1, %s29_s27), 0  ;;  %p277_p3 = pnand %p661_p0, %p276_p2 }
   0x6   : > { %p318_p4 = scmp.lt.s32.totalorder (!%p277_p3), %s756_s24, 1 }
   0x7   : > { %280 = sbr.rel (%p277_p3) target bundleno = 764 (0x2fc), region = 48 }
   0xc   : > { %v732_v0 = vld [vmem:[%s884_s1 + $0x8] sm:$0xff]   ;;  %v766_v1 = vmov 0.0   ;;  %v733_v2 = vld [vmem:[%s884_s1] sm:$0xff]   ;;  %vm767_vm0 = vmmov 0   ;;  %vm344_vm1 = vcmask 261120   ;;  %s896_s24 = smov (!%p318_p4, %s756_s24), 1 }
   0xd   : > { %686 = vmatprep.subr.bf16.mxu0 %v766_v1  ;;  %694 = vmatprep.subr.bf16.mxu1 %v766_v1  ;;  %345 = vst.msk [vmem:[#allocation2] sm:$0xff] %vm344_vm1, %v766_v1  ;;  %s662_s9 = sshll.u32 %s896_s24, 2  ;;  %v734_v4 = vld [vmem:[%s886_s3 + $0x18] sm:$0xff]   ;;  %v735_v5 = vld [vmem:[%s886_s3 + $0x10] sm:$0xff]   ;;  %v736_v6 = vld [vmem:[%s886_s3 + $0x8] sm:$0xff]   ;;  %vm457_vm2 = vcmask 523264  }
   0xe   : > { %687 = vmatpush3.bf16.msra.mxu0 %v732_v0  ;;  %690 = vmatprep.mubr.msk.bf16.mxu0 %vm767_vm0, %v766_v1  ;;  %s321_s12 = scalar_lea.vmem %s883_s0, %s662_s9  ;;  %v737_v7 = vld [vmem:[%s886_s3] sm:$0xff]   ;;  %s338_s13 = scalar_lea.vmem %s890_s7, %s662_s9  ;;  %vm548_vm3 = vcmask 257024  }
   0xf   : > { %688 = vmatprep.subr.bf16.mxu0 %v766_v1  ;;  %702 = vmatprep.mubr.msk.bf16.mxu1 %vm767_vm0, %v766_v1  ;;  %v346_v3 = vld [vmem:[%s321_s12] sm:$0xf] }
  0x10   : > { %695 = vmatpush3.bf16.msra.mxu1 %v734_v4  ;;  %v664_v8 = vld [vmem:[%s885_s2] ss:$0 sm:$0xff]  ;;  %v515_v31 = vunpack.c.l.bf16 %v346_v3 }
  0x11   : > { %696 = vmatprep.subr.bf16.mxu1 %v766_v1  ;;  %v673_v30 = vld [vmem:[%s887_s4] ss:$0 sm:$0xff] }
  0x12   : > { %689 = vmatpush3.bf16.msra.mxu0 %v733_v2  ;;  %v674_v45 = vld [vmem:[%s888_s5] ss:$0 sm:$0xff] }
  0x13   : > { %v675_v47 = vld [vmem:[%s889_s6] ss:$0 sm:$0xff] }
  0x14   : > { %697 = vmatpush3.bf16.msra.mxu1 %v735_v5  ;;  %v423_v24 = vld [vmem:[#allocation2] sm:$0xff] }
  0x15   : > { %691 = vmatmul.mubr.msk.bf16.vlgmr.msra.gmra.mxu0 %vm344_vm1, %v346_v3  ;;  %698 = vmatprep.subr.bf16.mxu1 %v766_v1 }
  0x18   : > { %699 = vmatpush3.bf16.msra.mxu1 %v736_v6 }
  0x19   : > { %700 = vmatprep.subr.bf16.mxu1 %v766_v1 }
  0x1c   : > { %701 = vmatpush3.bf16.msra.mxu1 %v737_v7 }
  0xd5   : > { %v408_v9 = vpop.f32.mrf.mxu0 }
  0xd6   : > { %v409_v10 = vadd.f32 %v664_v8, %v408_v9 }
  0xd7   : > { %v692_v11 = vpop.f32.mrf.mxu0 }
  0xd8   : > { %v415_v12 = vmul.f32 0.044715, %v409_v10  ;;  %v414_v20 = vmul.f32 0.5, %v409_v10 }
  0xd9   : > { %v411_v13 = vpop.f32.mrf.mxu0 }
  0xda   : > { %v416_v14 = vmul.f32 %v415_v12, %v409_v10 }
  0xdb   : > { %v693_v15 = vpop.f32.mrf.mxu0 }
  0xdc   : > { %v417_v16 = vmul.f32 %v416_v14, %v409_v10 }
  0xde   : > { %v418_v17 = vadd.f32 %v417_v16, %v409_v10 }
  0xe0   : > { %v419_v18 = vmul.f32 0.7978846, %v418_v17 }
  0xe2   : > { %738 = vtanh.f32 %v419_v18 }
  0xef   : > { %v739_v19 = vpop.eup %738 }
  0xf0   : > { %v421_v21 = vadd.f32 1.0, %v739_v19 }
  0xf2   : > { %v422_v22 = vmul.f32 %v421_v21, %v414_v20 }
  0xf4   : > { %v424_v23 = vpack.c.bf16 %v422_v22, %v422_v22 }
  0xf6   : > { %703 = vmatmul.mubr.msk.bf16.vlgmr.msra.gmra.mxu1 %vm457_vm2, %v424_v23 }
 0x1b6   : > { %v495_v25 = vpop.f32.mrf.mxu1 }
 0x1b7   : > { %v501_v26 = vadd.f32 %v495_v25, %v423_v24 }
 0x1b8   : > { %v704_v27 = vpop.f32.mrf.mxu1 }
 0x1b9   : > { %502 = vst.msk [vmem:[#allocation2] sm:$0xff] %vm344_vm1, %v501_v26 }
 0x1ba   : > { %v498_v28 = vpop.f32.mrf.mxu1 }
 0x1bc   : > { %v705_v29 = vpop.f32.mrf.mxu1 }
 0x1c0   : > { %v506_v32 = vld [vmem:[#allocation2] sm:$0xff] }
 0x1c1   : > { %v514_v33 = vadd.f32 %v673_v30, %v506_v32 }
 0x1c3   : > { %v516_v34 = vadd.f32 %v515_v31, %v514_v33 }
 0x1c5   : > { %v517_v35 = vsel %vm344_vm1, %v516_v34, 0.0 }
 0x1c6   : > { %518 = vadd.xlane.f32.xlu0 %v517_v35 }
 0x24f   : > { %v519_v36 = vpop.xlane.xlu0 %518 }
 0x250   : > { %v521_v37 = vmul.f32 0.03125, %v519_v36 }
 0x252   : > { %v522_v38 = vsub.f32 %v516_v34, %v521_v37 }
 0x254   : > { %v523_v39 = vmul.f32 %v522_v38, %v522_v38 }
 0x256   : > { %v524_v40 = vsel %vm344_vm1, %v523_v39, 0.0 }
 0x257   : > { %525 = vadd.xlane.f32.xlu0 %v524_v40 }
 0x2e0   : > { %v526_v41 = vpop.xlane.xlu0 %525 }
 0x2e1   : > { %v527_v42 = vmul.f32 0.03125, %v526_v41 }
 0x2e3   : > { %v528_v43 = vadd.f32 1e-12, %v527_v42 }
 0x2e5   : > { %740 = vrsqrt.f32 %v528_v43 }
 0x2f2   : > { %v741_v44 = vpop.eup %740 }
 0x2f3   : > { %v530_v46 = vmul.f32 %v741_v44, %v522_v38 }
 0x2f5   : > { %v538_v48 = vmul.f32 %v674_v45, %v530_v46 }
 0x2f7   : > { %v546_v49 = vadd.f32 %v675_v47, %v538_v48 }
 0x2f9   : > { %v547_v50 = vpack.c.bf16 %v546_v49, %v546_v49 }
 0x2fb   : > { %549 = vst.msk [vmem:[%s338_s13] sm:$0xf] %vm548_vm3, %v547_v50 }
 0x2fc PF: > { %s17_s26 = sadd.s32 1, %s764_s26   ;;  %s891_s24 = smov %s760_s25 }
 0x2fd   : > { %p14_p5 = scmp.ge.s32.totalorder %s17_s26, 4   ;;  %s892_s25 = smov %s894_s27 }
 0x2ff   :  { %16 = sbr.rel (!%p14_p5) target bundleno = 2 (0x2), region = 95 }

</bundles_post_ra>
